<compile_context>
chip_gen: v7x
topology: tpu7x:2x2x1
jax: 0.10.0
libtpu: 0.0.40
codegen_flags: <defaults>
</compile_context>

<pallas_src>
import math
from functools import partial

import jax
import jax.numpy as jnp
from jax.experimental import pallas as pl
from jax.experimental.pallas import tpu as pltpu

# ----------------------------- configuration --------------------------------
DIM_OUT = 3          # dim_out
NINP    = 4          # ninp
NHEAD   = 2          # nhead
NHID    = 32         # nhid (d_model == dim_feedforward in the module)
NSEQ    = 8          # nseq
NLAYERS = 2          # nlayers
DROPOUT = 0.0        # dropout (eval-mode / 0 -> deterministic, no-op)
BS      = 2          # batch size

HEAD_DIM = NHID // NHEAD
DIN      = NINP + NSEQ + 1          # input to self.linear: ninp + nseq + 1
LN_EPS   = 1e-5
ROWS     = BS * NSEQ                # token rows, batch-major (row = b*NSEQ + l)


# ------------------------------ fused Pallas kernel --------------------------
def fused_forward_kernel(x_ref, mask_ref, w_in_ref, bpe_ref,
                         wqkv_ref, bqkv_ref, wo_ref, bo_ref,
                         w1_ref, b1_ref, w2_ref, b2_ref,
                         ln1w_ref, ln1b_ref, ln2w_ref, ln2b_ref,
                         dec_w_ref, dec_b_ref, o_ref):
    # x: (ROWS, DIN) batch-major token rows; o: (BS, DIM_OUT).
    x = x_ref[...]
    mask = mask_ref[...]                      # (NSEQ, NSEQ) additive causal mask

    # ---- input linear; Linear bias + positional encoding pre-folded --------
    h = jnp.dot(x, w_in_ref[...], preferred_element_type=jnp.float32) + bpe_ref[...]
    # TODO(synk): dropout in PositionalEncoding / encoder layers skipped (p=0, eval mode).

    def layernorm(t, w, b):
        mu = jnp.mean(t, axis=-1, keepdims=True)
        var = jnp.mean((t - mu) ** 2, axis=-1, keepdims=True)
        return (t - mu) * jax.lax.rsqrt(var + LN_EPS) * w + b

    for layer in range(NLAYERS):              # static unroll (NLAYERS = 2)
        # ---- multi-head self attention (post-norm TransformerEncoderLayer) -
        qkv = jnp.dot(h, wqkv_ref[layer],
                      preferred_element_type=jnp.float32) + bqkv_ref[layer]
        attn = bo_ref[layer]                  # (1, NHID) out-proj bias (broadcast)
        for hd in range(NHEAD):               # static unroll (NHEAD = 2)
            q = qkv[:, hd * HEAD_DIM:(hd + 1) * HEAD_DIM].reshape(BS, NSEQ, HEAD_DIM)
            k = qkv[:, NHID + hd * HEAD_DIM:
                       NHID + (hd + 1) * HEAD_DIM].reshape(BS, NSEQ, HEAD_DIM)
            v = qkv[:, 2 * NHID + hd * HEAD_DIM:
                       2 * NHID + (hd + 1) * HEAD_DIM].reshape(BS, NSEQ, HEAD_DIM)
            # 1/sqrt(head_dim) is pre-folded into the Q columns of wqkv/bqkv.
            s = jnp.einsum('bqd,bkd->bqk', q, k,
                           preferred_element_type=jnp.float32) + mask[None, :, :]
            m = jnp.max(s, axis=-1, keepdims=True)
            p = jnp.exp(s - m)
            p = p * pl.reciprocal(jnp.sum(p, axis=-1, keepdims=True), approx=True)
            oh = jnp.einsum('bqk,bkd->bqd', p, v,
                            preferred_element_type=jnp.float32)
            # concat + out_proj folded: accumulate through per-head Wo slice.
            attn = attn + jnp.dot(oh.reshape(ROWS, HEAD_DIM), wo_ref[layer, hd],
                                  preferred_element_type=jnp.float32)

        h1 = layernorm(h + attn, ln1w_ref[layer], ln1b_ref[layer])

        # ---- feed forward (ReLU) -------------------------------------------
        f = jnp.dot(h1, w1_ref[layer], preferred_element_type=jnp.float32) + b1_ref[layer]
        f = jnp.maximum(f, 0.0)
        f = jnp.dot(f, w2_ref[layer], preferred_element_type=jnp.float32) + b2_ref[layer]
        h = layernorm(h1 + f, ln2w_ref[layer], ln2b_ref[layer])

    # ---- decoder: permute(1,0,2).reshape(bs,-1) @ W_dec  + sigmoid ----------
    # done as a sum over sequence positions to avoid lane-dim reshapes.
    h3 = h.reshape(BS, NSEQ, NHID)
    y = dec_b_ref[...]                        # (1, DIM_OUT)
    for l in range(NSEQ):
        y = y + jnp.dot(h3[:, l, :], dec_w_ref[l],
                        preferred_element_type=jnp.float32)
    o_ref[...] = jax.nn.sigmoid(y)


def fused_forward(x2d, mask, kp):
    args = (x2d, mask, kp['w_in'], kp['bias_pe'],
            kp['wqkv'], kp['bqkv'], kp['wo'], kp['bo'],
            kp['w1'], kp['b1'], kp['w2'], kp['b2'],
            kp['ln1w'], kp['ln1b'], kp['ln2w'], kp['ln2b'],
            kp['dec_w'], kp['dec_b'])
    vmem = pl.BlockSpec(memory_space=pltpu.MemorySpace.VMEM)
    return pl.pallas_call(
        fused_forward_kernel,
        out_shape=jax.ShapeDtypeStruct((BS, DIM_OUT), jnp.float32),
        in_specs=[vmem] * len(args),
        out_specs=vmem,
    )(*args)


# ------------------------------ params / helpers ------------------------------
def _unif(key, shape, bound):
    return jax.random.uniform(key, shape, jnp.float32, -bound, bound)


def init_params(key):
    """Parameters in PyTorch layout (out_features, in_features)."""
    keys = jax.random.split(key, 2 + NLAYERS)
    params = {}
    k0, k1 = jax.random.split(keys[0])
    lb = 1.0 / math.sqrt(DIN)
    params['lin_w'] = _unif(k0, (NHID, DIN), lb)           # Linear(ninp+nseq+1, nhid)
    params['lin_b'] = _unif(k1, (NHID,), lb)
    # decoder: init_weights() -> U(-0.1, 0.1), bias = 0
    params['dec_w'] = _unif(keys[1], (DIM_OUT, NHID * NSEQ), 0.1)
    params['dec_b'] = jnp.zeros((DIM_OUT,), jnp.float32)

    layers = []
    for l in range(NLAYERS):
        k = jax.random.split(keys[2 + l], 6)
        e = NHID
        bound = 1.0 / math.sqrt(e)
        layers.append(dict(
            wqkv=_unif(k[0], (3 * e, e), bound),   # in_proj_weight (3E, E)
            bqkv=jnp.zeros((3 * e,), jnp.float32),
            wo=_unif(k[1], (e, e), bound),         # out_proj
            bo=jnp.zeros((e,), jnp.float32),
            w1=_unif(k[2], (e, e), bound),         # linear1 (dim_feedforward = nhid)
            b1=_unif(k[3], (e,), bound),
            w2=_unif(k[4], (e, e), bound),         # linear2
            b2=_unif(k[5], (e,), bound),
            ln1w=jnp.ones((e,), jnp.float32), ln1b=jnp.zeros((e,), jnp.float32),
            ln2w=jnp.ones((e,), jnp.float32), ln2b=jnp.zeros((e,), jnp.float32),
        ))
    params['layers'] = layers
    return params


def positional_encoding(d_model, max_len):
    position = jnp.arange(max_len, dtype=jnp.float32)[:, None]
    div_term = jnp.exp(jnp.arange(0, d_model, 2, dtype=jnp.float32)
                       * (-math.log(10000.0) / d_model))
    pe = jnp.zeros((max_len, d_model), jnp.float32)
    pe = pe.at[:, 0::2].set(jnp.sin(position * div_term))
    pe = pe.at[:, 1::2].set(jnp.cos(position * div_term))
    return pe


def causal_mask(sz):
    i = jnp.arange(sz)[:, None]
    j = jnp.arange(sz)[None, :]
    return jnp.where(j <= i, 0.0, -jnp.inf).astype(jnp.float32)


def prepare_params(params):
    """One-time conversion to kernel-ready tensors: pre-transposed weights,
    pre-broadcast biases, bias+PE folded, 1/sqrt(head_dim) folded into Q."""
    scale = 1.0 / math.sqrt(HEAD_DIM)
    pe = positional_encoding(NHID, NSEQ)                             # (NSEQ, NHID)
    bias_pe = jnp.tile(pe + params['lin_b'][None, :], (BS, 1))       # (ROWS, NHID)
    qscale = jnp.concatenate([jnp.full((NHID,), scale, jnp.float32),
                              jnp.ones((2 * NHID,), jnp.float32)])   # scale Q only

    def stack(fn):
        return jnp.stack([fn(lyr) for lyr in params['layers']])

    return dict(
        w_in=params['lin_w'].T,                                      # (DIN, NHID)
        bias_pe=bias_pe,
        wqkv=stack(lambda l: l['wqkv'].T) * qscale[None, None, :],   # (NL, NHID, 3*NHID)
        bqkv=stack(lambda l: l['bqkv'][None, :]) * qscale[None, None, :],
        wo=stack(lambda l: l['wo'].T).reshape(NLAYERS, NHEAD, HEAD_DIM, NHID),
        bo=stack(lambda l: l['bo'][None, :]),
        w1=stack(lambda l: l['w1'].T),
        b1=stack(lambda l: l['b1'][None, :]),
        w2=stack(lambda l: l['w2'].T),
        b2=stack(lambda l: l['b2'][None, :]),
        ln1w=stack(lambda l: l['ln1w'][None, :]),
        ln1b=stack(lambda l: l['ln1b'][None, :]),
        ln2w=stack(lambda l: l['ln2w'][None, :]),
        ln2b=stack(lambda l: l['ln2b'][None, :]),
        dec_w=params['dec_w'].T.reshape(NSEQ, NHID, DIM_OUT),        # per-position blocks
        dec_b=params['dec_b'][None, :],
    )


# ------------------------------ forward (thin glue + one kernel) --------------
def forward(kp, src, time_in, src_mask):
    # src: (nseq, bs, ninp)   time_in: (nseq, bs, 1)   src_mask: (nseq, nseq)
    src_b = jnp.transpose(src, (1, 0, 2))                            # (BS, NSEQ, NINP)
    time_b = jnp.transpose(time_in, (1, 0, 2))                       # (BS, NSEQ, 1)

    # get_time_interval (batch-major): relu -> cumsum -> |pos_i - pos_j|
    t = jnp.maximum(time_b[..., 0], 0.0)                             # (BS, NSEQ)
    positions = jnp.cumsum(t, axis=1)
    dist = jnp.abs(positions[:, :, None] - positions[:, None, :])    # (BS, NSEQ, NSEQ)

    # torch.cat((src, time, time_interval), dim=2), batch-major token rows
    x2d = jnp.concatenate((src_b, time_b, dist), axis=2).reshape(ROWS, DIN)
    return fused_forward(x2d, src_mask, kp)


# ------------------------------ main ------------------------------------------
if __name__ == "__main__":
    key = jax.random.PRNGKey(0)
    kp_key, ks, kt = jax.random.split(key, 3)
    params = init_params(kp_key)
    kparams = prepare_params(params)

    src = jax.random.normal(ks, (NSEQ, BS, NINP), jnp.float32)
    time_in = jax.random.uniform(kt, (NSEQ, BS, 1), jnp.float32)
    src_mask = causal_mask(NSEQ)

    out = jax.jit(partial(forward, kparams))(src, time_in, src_mask)
    out = jax.block_until_ready(out)

    assert out.shape == (BS, DIM_OUT), out.shape
    assert bool(jnp.all(jnp.isfinite(out)))
    assert bool(jnp.all((out >= 0.0) & (out <= 1.0)))   # sigmoid range
    print("KERNEL_OK")
</pallas_src>

<mosaic_0001>
module attributes {stable_mosaic.version = 11 : i64} {
  func.func @fused_forward_kernel(%arg0: memref<16x13xf32, #tpu.memory_space<vmem>>, %arg1: memref<8x8xf32, #tpu.memory_space<vmem>>, %arg2: memref<13x32xf32, #tpu.memory_space<vmem>>, %arg3: memref<16x32xf32, #tpu.memory_space<vmem>>, %arg4: memref<2x32x96xf32, #tpu.memory_space<vmem>>, %arg5: memref<2x1x96xf32, #tpu.memory_space<vmem>>, %arg6: memref<2x2x16x32xf32, #tpu.memory_space<vmem>>, %arg7: memref<2x1x32xf32, #tpu.memory_space<vmem>>, %arg8: memref<2x32x32xf32, #tpu.memory_space<vmem>>, %arg9: memref<2x1x32xf32, #tpu.memory_space<vmem>>, %arg10: memref<2x32x32xf32, #tpu.memory_space<vmem>>, %arg11: memref<2x1x32xf32, #tpu.memory_space<vmem>>, %arg12: memref<2x1x32xf32, #tpu.memory_space<vmem>>, %arg13: memref<2x1x32xf32, #tpu.memory_space<vmem>>, %arg14: memref<2x1x32xf32, #tpu.memory_space<vmem>>, %arg15: memref<2x1x32xf32, #tpu.memory_space<vmem>>, %arg16: memref<8x32x3xf32, #tpu.memory_space<vmem>>, %arg17: memref<1x3xf32, #tpu.memory_space<vmem>>, %arg18: memref<2x3xf32, #tpu.memory_space<vmem>>) attributes {dimension_semantics = [], scalar_prefetch = 0 : i64, scratch_operands = 0 : i64, tpu.core_type = #tpu.core_type<tc>} {
    %c0 = arith.constant 0 : index
    %c0_0 = arith.constant 0 : index
    %0 = vector.load %arg0[%c0, %c0_0] : memref<16x13xf32, #tpu.memory_space<vmem>>, vector<16x13xf32>
    %c0_1 = arith.constant 0 : index
    %c0_2 = arith.constant 0 : index
    %1 = vector.load %arg1[%c0_1, %c0_2] : memref<8x8xf32, #tpu.memory_space<vmem>>, vector<8x8xf32>
    %c0_3 = arith.constant 0 : index
    %c0_4 = arith.constant 0 : index
    %2 = vector.load %arg2[%c0_3, %c0_4] : memref<13x32xf32, #tpu.memory_space<vmem>>, vector<13x32xf32>
    %cst = arith.constant dense<0.000000e+00> : vector<16x32xf32>
    %3 = tpu.matmul %0, %2, %cst {dimension_numbers = #tpu.dot_dimension_numbers<[1], [0], [0], [1], [0, 0, 1, 1], [], []>} : vector<16x13xf32>, vector<13x32xf32>, vector<16x32xf32> -> vector<16x32xf32>
    %c0_5 = arith.constant 0 : index
    %c0_6 = arith.constant 0 : index
    %4 = vector.load %arg3[%c0_5, %c0_6] : memref<16x32xf32, #tpu.memory_space<vmem>>, vector<16x32xf32>
    %5 = arith.addf %3, %4 : vector<16x32xf32>
    %c0_7 = arith.constant 0 : index
    %c0_8 = arith.constant 0 : index
    %c0_9 = arith.constant 0 : index
    %6 = vector.load %arg4[%c0_7, %c0_8, %c0_9] : memref<2x32x96xf32, #tpu.memory_space<vmem>>, vector<1x32x96xf32>
    %7 = vector.shape_cast %6 : vector<1x32x96xf32> to vector<32x96xf32>
    %cst_10 = arith.constant dense<0.000000e+00> : vector<16x96xf32>
    %8 = tpu.matmul %5, %7, %cst_10 {dimension_numbers = #tpu.dot_dimension_numbers<[1], [0], [0], [1], [0, 0, 1, 1], [], []>} : vector<16x32xf32>, vector<32x96xf32>, vector<16x96xf32> -> vector<16x96xf32>
    %c0_11 = arith.constant 0 : index
    %c0_12 = arith.constant 0 : index
    %c0_13 = arith.constant 0 : index
    %9 = vector.load %arg5[%c0_11, %c0_12, %c0_13] : memref<2x1x96xf32, #tpu.memory_space<vmem>>, vector<1x1x96xf32>
    %10 = vector.shape_cast %9 : vector<1x1x96xf32> to vector<1x96xf32>
    %11 = vector.broadcast %10 : vector<1x96xf32> to vector<16x96xf32>
    %12 = arith.addf %8, %11 : vector<16x96xf32>
    %c0_14 = arith.constant 0 : index
    %c0_15 = arith.constant 0 : index
    %c0_16 = arith.constant 0 : index
    %13 = vector.load %arg7[%c0_14, %c0_15, %c0_16] : memref<2x1x32xf32, #tpu.memory_space<vmem>>, vector<1x1x32xf32>
    %14 = vector.shape_cast %13 : vector<1x1x32xf32> to vector<1x32xf32>
    %15 = vector.extract_strided_slice %12 {offsets = [0, 0], sizes = [16, 16], strides = [1, 1]} : vector<16x96xf32> to vector<16x16xf32>
    %16 = vector.shape_cast %15 : vector<16x16xf32> to vector<2x8x16xf32>
    %17 = vector.extract_strided_slice %12 {offsets = [0, 32], sizes = [16, 16], strides = [1, 1]} : vector<16x96xf32> to vector<16x16xf32>
    %18 = vector.shape_cast %17 : vector<16x16xf32> to vector<2x8x16xf32>
    %19 = vector.extract_strided_slice %12 {offsets = [0, 64], sizes = [16, 16], strides = [1, 1]} : vector<16x96xf32> to vector<16x16xf32>
    %20 = vector.shape_cast %19 : vector<16x16xf32> to vector<2x8x16xf32>
    "tpu.trace_start"() <{level = 10 : i32, message = "bqd,bkd->bqk"}> : () -> ()
    %cst_17 = arith.constant dense<0.000000e+00> : vector<2x8x8xf32>
    %21 = tpu.matmul %16, %18, %cst_17 {dimension_numbers = #tpu.dot_dimension_numbers<[2], [2], [1], [1], [0, 0, 0, 1, 1, 1], [0], [0]>} : vector<2x8x16xf32>, vector<2x8x16xf32>, vector<2x8x8xf32> -> vector<2x8x8xf32>
    "tpu.trace_stop"() : () -> ()
    %22 = vector.shape_cast %1 : vector<8x8xf32> to vector<1x8x8xf32>
    %23 = vector.broadcast %22 : vector<1x8x8xf32> to vector<2x8x8xf32>
    %24 = arith.addf %21, %23 : vector<2x8x8xf32>
    %cst_18 = arith.constant dense<0xFF800000> : vector<2x8xf32>
    %25 = vector.multi_reduction <maximumf>, %24, %cst_18 [2] : vector<2x8x8xf32> to vector<2x8xf32>
    %26 = vector.shape_cast %25 : vector<2x8xf32> to vector<2x8x1xf32>
    %27 = vector.broadcast %26 : vector<2x8x1xf32> to vector<2x8x8xf32>
    %28 = arith.subf %24, %27 : vector<2x8x8xf32>
    %29 = math.exp %28 : vector<2x8x8xf32>
    %cst_19 = arith.constant dense<0.000000e+00> : vector<2x8xf32>
    %30 = vector.multi_reduction <add>, %29, %cst_19 [2] : vector<2x8x8xf32> to vector<2x8xf32>
    %31 = vector.shape_cast %30 : vector<2x8xf32> to vector<2x8x1xf32>
    %32 = tpu.reciprocal %31 {approx = true} : vector<2x8x1xf32> -> vector<2x8x1xf32>
    %33 = vector.broadcast %32 : vector<2x8x1xf32> to vector<2x8x8xf32>
    %34 = arith.mulf %29, %33 : vector<2x8x8xf32>
    "tpu.trace_start"() <{level = 10 : i32, message = "bqk,bkd->bqd"}> : () -> ()
    %cst_20 = arith.constant dense<0.000000e+00> : vector<2x8x16xf32>
    %35 = tpu.matmul %34, %20, %cst_20 {dimension_numbers = #tpu.dot_dimension_numbers<[2], [1], [1], [2], [0, 0, 0, 1, 1, 2], [0], [0]>} : vector<2x8x8xf32>, vector<2x8x16xf32>, vector<2x8x16xf32> -> vector<2x8x16xf32>
    "tpu.trace_stop"() : () -> ()
    %36 = vector.shape_cast %35 : vector<2x8x16xf32> to vector<16x16xf32>
    %c0_21 = arith.constant 0 : index
    %c0_22 = arith.constant 0 : index
    %c0_23 = arith.constant 0 : index
    %c0_24 = arith.constant 0 : index
    %37 = vector.load %arg6[%c0_21, %c0_22, %c0_23, %c0_24] : memref<2x2x16x32xf32, #tpu.memory_space<vmem>>, vector<1x1x16x32xf32>
    %38 = vector.shape_cast %37 : vector<1x1x16x32xf32> to vector<16x32xf32>
    %cst_25 = arith.constant dense<0.000000e+00> : vector<16x32xf32>
    %39 = tpu.matmul %36, %38, %cst_25 {dimension_numbers = #tpu.dot_dimension_numbers<[1], [0], [0], [1], [0, 0, 1, 1], [], []>} : vector<16x16xf32>, vector<16x32xf32>, vector<16x32xf32> -> vector<16x32xf32>
    %40 = vector.broadcast %14 : vector<1x32xf32> to vector<16x32xf32>
    %41 = arith.addf %40, %39 : vector<16x32xf32>
    %42 = vector.extract_strided_slice %12 {offsets = [0, 16], sizes = [16, 16], strides = [1, 1]} : vector<16x96xf32> to vector<16x16xf32>
    %43 = vector.shape_cast %42 : vector<16x16xf32> to vector<2x8x16xf32>
    %44 = vector.extract_strided_slice %12 {offsets = [0, 48], sizes = [16, 16], strides = [1, 1]} : vector<16x96xf32> to vector<16x16xf32>
    %45 = vector.shape_cast %44 : vector<16x16xf32> to vector<2x8x16xf32>
    %46 = vector.extract_strided_slice %12 {offsets = [0, 80], sizes = [16, 16], strides = [1, 1]} : vector<16x96xf32> to vector<16x16xf32>
    %47 = vector.shape_cast %46 : vector<16x16xf32> to vector<2x8x16xf32>
    "tpu.trace_start"() <{level = 10 : i32, message = "bqd,bkd->bqk"}> : () -> ()
    %cst_26 = arith.constant dense<0.000000e+00> : vector<2x8x8xf32>
    %48 = tpu.matmul %43, %45, %cst_26 {dimension_numbers = #tpu.dot_dimension_numbers<[2], [2], [1], [1], [0, 0, 0, 1, 1, 1], [0], [0]>} : vector<2x8x16xf32>, vector<2x8x16xf32>, vector<2x8x8xf32> -> vector<2x8x8xf32>
    "tpu.trace_stop"() : () -> ()
    %49 = vector.shape_cast %1 : vector<8x8xf32> to vector<1x8x8xf32>
    %50 = vector.broadcast %49 : vector<1x8x8xf32> to vector<2x8x8xf32>
    %51 = arith.addf %48, %50 : vector<2x8x8xf32>
    %cst_27 = arith.constant dense<0xFF800000> : vector<2x8xf32>
    %52 = vector.multi_reduction <maximumf>, %51, %cst_27 [2] : vector<2x8x8xf32> to vector<2x8xf32>
    %53 = vector.shape_cast %52 : vector<2x8xf32> to vector<2x8x1xf32>
    %54 = vector.broadcast %53 : vector<2x8x1xf32> to vector<2x8x8xf32>
    %55 = arith.subf %51, %54 : vector<2x8x8xf32>
    %56 = math.exp %55 : vector<2x8x8xf32>
    %cst_28 = arith.constant dense<0.000000e+00> : vector<2x8xf32>
    %57 = vector.multi_reduction <add>, %56, %cst_28 [2] : vector<2x8x8xf32> to vector<2x8xf32>
    %58 = vector.shape_cast %57 : vector<2x8xf32> to vector<2x8x1xf32>
    %59 = tpu.reciprocal %58 {approx = true} : vector<2x8x1xf32> -> vector<2x8x1xf32>
    %60 = vector.broadcast %59 : vector<2x8x1xf32> to vector<2x8x8xf32>
    %61 = arith.mulf %56, %60 : vector<2x8x8xf32>
    "tpu.trace_start"() <{level = 10 : i32, message = "bqk,bkd->bqd"}> : () -> ()
    %cst_29 = arith.constant dense<0.000000e+00> : vector<2x8x16xf32>
    %62 = tpu.matmul %61, %47, %cst_29 {dimension_numbers = #tpu.dot_dimension_numbers<[2], [1], [1], [2], [0, 0, 0, 1, 1, 2], [0], [0]>} : vector<2x8x8xf32>, vector<2x8x16xf32>, vector<2x8x16xf32> -> vector<2x8x16xf32>
    "tpu.trace_stop"() : () -> ()
    %63 = vector.shape_cast %62 : vector<2x8x16xf32> to vector<16x16xf32>
    %c0_30 = arith.constant 0 : index
    %c1 = arith.constant 1 : index
    %c0_31 = arith.constant 0 : index
    %c0_32 = arith.constant 0 : index
    %64 = vector.load %arg6[%c0_30, %c1, %c0_31, %c0_32] : memref<2x2x16x32xf32, #tpu.memory_space<vmem>>, vector<1x1x16x32xf32>
    %65 = vector.shape_cast %64 : vector<1x1x16x32xf32> to vector<16x32xf32>
    %cst_33 = arith.constant dense<0.000000e+00> : vector<16x32xf32>
    %66 = tpu.matmul %63, %65, %cst_33 {dimension_numbers = #tpu.dot_dimension_numbers<[1], [0], [0], [1], [0, 0, 1, 1], [], []>} : vector<16x16xf32>, vector<16x32xf32>, vector<16x32xf32> -> vector<16x32xf32>
    %67 = arith.addf %41, %66 : vector<16x32xf32>
    %68 = arith.addf %5, %67 : vector<16x32xf32>
    %c0_34 = arith.constant 0 : index
    %c0_35 = arith.constant 0 : index
    %c0_36 = arith.constant 0 : index
    %69 = vector.load %arg12[%c0_34, %c0_35, %c0_36] : memref<2x1x32xf32, #tpu.memory_space<vmem>>, vector<1x1x32xf32>
    %70 = vector.shape_cast %69 : vector<1x1x32xf32> to vector<1x32xf32>
    %c0_37 = arith.constant 0 : index
    %c0_38 = arith.constant 0 : index
    %c0_39 = arith.constant 0 : index
    %71 = vector.load %arg13[%c0_37, %c0_38, %c0_39] : memref<2x1x32xf32, #tpu.memory_space<vmem>>, vector<1x1x32xf32>
    %72 = vector.shape_cast %71 : vector<1x1x32xf32> to vector<1x32xf32>
    %cst_40 = arith.constant dense<0.000000e+00> : vector<16xf32>
    %73 = vector.multi_reduction <add>, %68, %cst_40 [1] : vector<16x32xf32> to vector<16xf32>
    %74 = vector.shape_cast %73 : vector<16xf32> to vector<16x1xf32>
    %cst_41 = arith.constant 3.200000e+01 : f32
    %75 = vector.broadcast %cst_41 : f32 to vector<16x1xf32>
    %76 = arith.divf %74, %75 : vector<16x1xf32>
    %77 = vector.broadcast %76 : vector<16x1xf32> to vector<16x32xf32>
    %78 = arith.subf %68, %77 : vector<16x32xf32>
    %79 = arith.mulf %78, %78 : vector<16x32xf32>
    %cst_42 = arith.constant dense<0.000000e+00> : vector<16xf32>
    %80 = vector.multi_reduction <add>, %79, %cst_42 [1] : vector<16x32xf32> to vector<16xf32>
    %81 = vector.shape_cast %80 : vector<16xf32> to vector<16x1xf32>
    %cst_43 = arith.constant 3.200000e+01 : f32
    %82 = vector.broadcast %cst_43 : f32 to vector<16x1xf32>
    %83 = arith.divf %81, %82 : vector<16x1xf32>
    %84 = vector.broadcast %76 : vector<16x1xf32> to vector<16x32xf32>
    %85 = arith.subf %68, %84 : vector<16x32xf32>
    %cst_44 = arith.constant 9.99999974E-6 : f32
    %86 = vector.broadcast %cst_44 : f32 to vector<16x1xf32>
    %87 = arith.addf %83, %86 : vector<16x1xf32>
    %88 = math.rsqrt %87 : vector<16x1xf32>
    %89 = vector.broadcast %88 : vector<16x1xf32> to vector<16x32xf32>
    %90 = arith.mulf %85, %89 : vector<16x32xf32>
    %91 = vector.broadcast %70 : vector<1x32xf32> to vector<16x32xf32>
    %92 = arith.mulf %90, %91 : vector<16x32xf32>
    %93 = vector.broadcast %72 : vector<1x32xf32> to vector<16x32xf32>
    %94 = arith.addf %92, %93 : vector<16x32xf32>
    %c0_45 = arith.constant 0 : index
    %c0_46 = arith.constant 0 : index
    %c0_47 = arith.constant 0 : index
    %95 = vector.load %arg8[%c0_45, %c0_46, %c0_47] : memref<2x32x32xf32, #tpu.memory_space<vmem>>, vector<1x32x32xf32>
    %96 = vector.shape_cast %95 : vector<1x32x32xf32> to vector<32x32xf32>
    %cst_48 = arith.constant dense<0.000000e+00> : vector<16x32xf32>
    %97 = tpu.matmul %94, %96, %cst_48 {dimension_numbers = #tpu.dot_dimension_numbers<[1], [0], [0], [1], [0, 0, 1, 1], [], []>} : vector<16x32xf32>, vector<32x32xf32>, vector<16x32xf32> -> vector<16x32xf32>
    %c0_49 = arith.constant 0 : index
    %c0_50 = arith.constant 0 : index
    %c0_51 = arith.constant 0 : index
    %98 = vector.load %arg9[%c0_49, %c0_50, %c0_51] : memref<2x1x32xf32, #tpu.memory_space<vmem>>, vector<1x1x32xf32>
    %99 = vector.shape_cast %98 : vector<1x1x32xf32> to vector<1x32xf32>
    %100 = vector.broadcast %99 : vector<1x32xf32> to vector<16x32xf32>
    %101 = arith.addf %97, %100 : vector<16x32xf32>
    %cst_52 = arith.constant 0.000000e+00 : f32
    %102 = vector.broadcast %cst_52 : f32 to vector<16x32xf32>
    %103 = arith.maximumf %101, %102 : vector<16x32xf32>
    %c0_53 = arith.constant 0 : index
    %c0_54 = arith.constant 0 : index
    %c0_55 = arith.constant 0 : index
    %104 = vector.load %arg10[%c0_53, %c0_54, %c0_55] : memref<2x32x32xf32, #tpu.memory_space<vmem>>, vector<1x32x32xf32>
    %105 = vector.shape_cast %104 : vector<1x32x32xf32> to vector<32x32xf32>
    %cst_56 = arith.constant dense<0.000000e+00> : vector<16x32xf32>
    %106 = tpu.matmul %103, %105, %cst_56 {dimension_numbers = #tpu.dot_dimension_numbers<[1], [0], [0], [1], [0, 0, 1, 1], [], []>} : vector<16x32xf32>, vector<32x32xf32>, vector<16x32xf32> -> vector<16x32xf32>
    %c0_57 = arith.constant 0 : index
    %c0_58 = arith.constant 0 : index
    %c0_59 = arith.constant 0 : index
    %107 = vector.load %arg11[%c0_57, %c0_58, %c0_59] : memref<2x1x32xf32, #tpu.memory_space<vmem>>, vector<1x1x32xf32>
    %108 = vector.shape_cast %107 : vector<1x1x32xf32> to vector<1x32xf32>
    %109 = vector.broadcast %108 : vector<1x32xf32> to vector<16x32xf32>
    %110 = arith.addf %106, %109 : vector<16x32xf32>
    %111 = arith.addf %94, %110 : vector<16x32xf32>
    %c0_60 = arith.constant 0 : index
    %c0_61 = arith.constant 0 : index
    %c0_62 = arith.constant 0 : index
    %112 = vector.load %arg14[%c0_60, %c0_61, %c0_62] : memref<2x1x32xf32, #tpu.memory_space<vmem>>, vector<1x1x32xf32>
    %113 = vector.shape_cast %112 : vector<1x1x32xf32> to vector<1x32xf32>
    %c0_63 = arith.constant 0 : index
    %c0_64 = arith.constant 0 : index
    %c0_65 = arith.constant 0 : index
    %114 = vector.load %arg15[%c0_63, %c0_64, %c0_65] : memref<2x1x32xf32, #tpu.memory_space<vmem>>, vector<1x1x32xf32>
    %115 = vector.shape_cast %114 : vector<1x1x32xf32> to vector<1x32xf32>
    %cst_66 = arith.constant dense<0.000000e+00> : vector<16xf32>
    %116 = vector.multi_reduction <add>, %111, %cst_66 [1] : vector<16x32xf32> to vector<16xf32>
    %117 = vector.shape_cast %116 : vector<16xf32> to vector<16x1xf32>
    %cst_67 = arith.constant 3.200000e+01 : f32
    %118 = vector.broadcast %cst_67 : f32 to vector<16x1xf32>
    %119 = arith.divf %117, %118 : vector<16x1xf32>
    %120 = vector.broadcast %119 : vector<16x1xf32> to vector<16x32xf32>
    %121 = arith.subf %111, %120 : vector<16x32xf32>
    %122 = arith.mulf %121, %121 : vector<16x32xf32>
    %cst_68 = arith.constant dense<0.000000e+00> : vector<16xf32>
    %123 = vector.multi_reduction <add>, %122, %cst_68 [1] : vector<16x32xf32> to vector<16xf32>
    %124 = vector.shape_cast %123 : vector<16xf32> to vector<16x1xf32>
    %cst_69 = arith.constant 3.200000e+01 : f32
    %125 = vector.broadcast %cst_69 : f32 to vector<16x1xf32>
    %126 = arith.divf %124, %125 : vector<16x1xf32>
    %127 = vector.broadcast %119 : vector<16x1xf32> to vector<16x32xf32>
    %128 = arith.subf %111, %127 : vector<16x32xf32>
    %cst_70 = arith.constant 9.99999974E-6 : f32
    %129 = vector.broadcast %cst_70 : f32 to vector<16x1xf32>
    %130 = arith.addf %126, %129 : vector<16x1xf32>
    %131 = math.rsqrt %130 : vector<16x1xf32>
    %132 = vector.broadcast %131 : vector<16x1xf32> to vector<16x32xf32>
    %133 = arith.mulf %128, %132 : vector<16x32xf32>
    %134 = vector.broadcast %113 : vector<1x32xf32> to vector<16x32xf32>
    %135 = arith.mulf %133, %134 : vector<16x32xf32>
    %136 = vector.broadcast %115 : vector<1x32xf32> to vector<16x32xf32>
    %137 = arith.addf %135, %136 : vector<16x32xf32>
    %c1_71 = arith.constant 1 : index
    %c0_72 = arith.constant 0 : index
    %c0_73 = arith.constant 0 : index
    %138 = vector.load %arg4[%c1_71, %c0_72, %c0_73] : memref<2x32x96xf32, #tpu.memory_space<vmem>>, vector<1x32x96xf32>
    %139 = vector.shape_cast %138 : vector<1x32x96xf32> to vector<32x96xf32>
    %cst_74 = arith.constant dense<0.000000e+00> : vector<16x96xf32>
    %140 = tpu.matmul %137, %139, %cst_74 {dimension_numbers = #tpu.dot_dimension_numbers<[1], [0], [0], [1], [0, 0, 1, 1], [], []>} : vector<16x32xf32>, vector<32x96xf32>, vector<16x96xf32> -> vector<16x96xf32>
    %c1_75 = arith.constant 1 : index
    %c0_76 = arith.constant 0 : index
    %c0_77 = arith.constant 0 : index
    %141 = vector.load %arg5[%c1_75, %c0_76, %c0_77] : memref<2x1x96xf32, #tpu.memory_space<vmem>>, vector<1x1x96xf32>
    %142 = vector.shape_cast %141 : vector<1x1x96xf32> to vector<1x96xf32>
    %143 = vector.broadcast %142 : vector<1x96xf32> to vector<16x96xf32>
    %144 = arith.addf %140, %143 : vector<16x96xf32>
    %c1_78 = arith.constant 1 : index
    %c0_79 = arith.constant 0 : index
    %c0_80 = arith.constant 0 : index
    %145 = vector.load %arg7[%c1_78, %c0_79, %c0_80] : memref<2x1x32xf32, #tpu.memory_space<vmem>>, vector<1x1x32xf32>
    %146 = vector.shape_cast %145 : vector<1x1x32xf32> to vector<1x32xf32>
    %147 = vector.extract_strided_slice %144 {offsets = [0, 0], sizes = [16, 16], strides = [1, 1]} : vector<16x96xf32> to vector<16x16xf32>
    %148 = vector.shape_cast %147 : vector<16x16xf32> to vector<2x8x16xf32>
    %149 = vector.extract_strided_slice %144 {offsets = [0, 32], sizes = [16, 16], strides = [1, 1]} : vector<16x96xf32> to vector<16x16xf32>
    %150 = vector.shape_cast %149 : vector<16x16xf32> to vector<2x8x16xf32>
    %151 = vector.extract_strided_slice %144 {offsets = [0, 64], sizes = [16, 16], strides = [1, 1]} : vector<16x96xf32> to vector<16x16xf32>
    %152 = vector.shape_cast %151 : vector<16x16xf32> to vector<2x8x16xf32>
    "tpu.trace_start"() <{level = 10 : i32, message = "bqd,bkd->bqk"}> : () -> ()
    %cst_81 = arith.constant dense<0.000000e+00> : vector<2x8x8xf32>
    %153 = tpu.matmul %148, %150, %cst_81 {dimension_numbers = #tpu.dot_dimension_numbers<[2], [2], [1], [1], [0, 0, 0, 1, 1, 1], [0], [0]>} : vector<2x8x16xf32>, vector<2x8x16xf32>, vector<2x8x8xf32> -> vector<2x8x8xf32>
    "tpu.trace_stop"() : () -> ()
    %154 = vector.shape_cast %1 : vector<8x8xf32> to vector<1x8x8xf32>
    %155 = vector.broadcast %154 : vector<1x8x8xf32> to vector<2x8x8xf32>
    %156 = arith.addf %153, %155 : vector<2x8x8xf32>
    %cst_82 = arith.constant dense<0xFF800000> : vector<2x8xf32>
    %157 = vector.multi_reduction <maximumf>, %156, %cst_82 [2] : vector<2x8x8xf32> to vector<2x8xf32>
    %158 = vector.shape_cast %157 : vector<2x8xf32> to vector<2x8x1xf32>
    %159 = vector.broadcast %158 : vector<2x8x1xf32> to vector<2x8x8xf32>
    %160 = arith.subf %156, %159 : vector<2x8x8xf32>
    %161 = math.exp %160 : vector<2x8x8xf32>
    %cst_83 = arith.constant dense<0.000000e+00> : vector<2x8xf32>
    %162 = vector.multi_reduction <add>, %161, %cst_83 [2] : vector<2x8x8xf32> to vector<2x8xf32>
    %163 = vector.shape_cast %162 : vector<2x8xf32> to vector<2x8x1xf32>
    %164 = tpu.reciprocal %163 {approx = true} : vector<2x8x1xf32> -> vector<2x8x1xf32>
    %165 = vector.broadcast %164 : vector<2x8x1xf32> to vector<2x8x8xf32>
    %166 = arith.mulf %161, %165 : vector<2x8x8xf32>
    "tpu.trace_start"() <{level = 10 : i32, message = "bqk,bkd->bqd"}> : () -> ()
    %cst_84 = arith.constant dense<0.000000e+00> : vector<2x8x16xf32>
    %167 = tpu.matmul %166, %152, %cst_84 {dimension_numbers = #tpu.dot_dimension_numbers<[2], [1], [1], [2], [0, 0, 0, 1, 1, 2], [0], [0]>} : vector<2x8x8xf32>, vector<2x8x16xf32>, vector<2x8x16xf32> -> vector<2x8x16xf32>
    "tpu.trace_stop"() : () -> ()
    %168 = vector.shape_cast %167 : vector<2x8x16xf32> to vector<16x16xf32>
    %c1_85 = arith.constant 1 : index
    %c0_86 = arith.constant 0 : index
    %c0_87 = arith.constant 0 : index
    %c0_88 = arith.constant 0 : index
    %169 = vector.load %arg6[%c1_85, %c0_86, %c0_87, %c0_88] : memref<2x2x16x32xf32, #tpu.memory_space<vmem>>, vector<1x1x16x32xf32>
    %170 = vector.shape_cast %169 : vector<1x1x16x32xf32> to vector<16x32xf32>
    %cst_89 = arith.constant dense<0.000000e+00> : vector<16x32xf32>
    %171 = tpu.matmul %168, %170, %cst_89 {dimension_numbers = #tpu.dot_dimension_numbers<[1], [0], [0], [1], [0, 0, 1, 1], [], []>} : vector<16x16xf32>, vector<16x32xf32>, vector<16x32xf32> -> vector<16x32xf32>
    %172 = vector.broadcast %146 : vector<1x32xf32> to vector<16x32xf32>
    %173 = arith.addf %172, %171 : vector<16x32xf32>
    %174 = vector.extract_strided_slice %144 {offsets = [0, 16], sizes = [16, 16], strides = [1, 1]} : vector<16x96xf32> to vector<16x16xf32>
    %175 = vector.shape_cast %174 : vector<16x16xf32> to vector<2x8x16xf32>
    %176 = vector.extract_strided_slice %144 {offsets = [0, 48], sizes = [16, 16], strides = [1, 1]} : vector<16x96xf32> to vector<16x16xf32>
    %177 = vector.shape_cast %176 : vector<16x16xf32> to vector<2x8x16xf32>
    %178 = vector.extract_strided_slice %144 {offsets = [0, 80], sizes = [16, 16], strides = [1, 1]} : vector<16x96xf32> to vector<16x16xf32>
    %179 = vector.shape_cast %178 : vector<16x16xf32> to vector<2x8x16xf32>
    "tpu.trace_start"() <{level = 10 : i32, message = "bqd,bkd->bqk"}> : () -> ()
    %cst_90 = arith.constant dense<0.000000e+00> : vector<2x8x8xf32>
    %180 = tpu.matmul %175, %177, %cst_90 {dimension_numbers = #tpu.dot_dimension_numbers<[2], [2], [1], [1], [0, 0, 0, 1, 1, 1], [0], [0]>} : vector<2x8x16xf32>, vector<2x8x16xf32>, vector<2x8x8xf32> -> vector<2x8x8xf32>
    "tpu.trace_stop"() : () -> ()
    %181 = vector.shape_cast %1 : vector<8x8xf32> to vector<1x8x8xf32>
    %182 = vector.broadcast %181 : vector<1x8x8xf32> to vector<2x8x8xf32>
    %183 = arith.addf %180, %182 : vector<2x8x8xf32>
    %cst_91 = arith.constant dense<0xFF800000> : vector<2x8xf32>
    %184 = vector.multi_reduction <maximumf>, %183, %cst_91 [2] : vector<2x8x8xf32> to vector<2x8xf32>
    %185 = vector.shape_cast %184 : vector<2x8xf32> to vector<2x8x1xf32>
    %186 = vector.broadcast %185 : vector<2x8x1xf32> to vector<2x8x8xf32>
    %187 = arith.subf %183, %186 : vector<2x8x8xf32>
    %188 = math.exp %187 : vector<2x8x8xf32>
    %cst_92 = arith.constant dense<0.000000e+00> : vector<2x8xf32>
    %189 = vector.multi_reduction <add>, %188, %cst_92 [2] : vector<2x8x8xf32> to vector<2x8xf32>
    %190 = vector.shape_cast %189 : vector<2x8xf32> to vector<2x8x1xf32>
    %191 = tpu.reciprocal %190 {approx = true} : vector<2x8x1xf32> -> vector<2x8x1xf32>
    %192 = vector.broadcast %191 : vector<2x8x1xf32> to vector<2x8x8xf32>
    %193 = arith.mulf %188, %192 : vector<2x8x8xf32>
    "tpu.trace_start"() <{level = 10 : i32, message = "bqk,bkd->bqd"}> : () -> ()
    %cst_93 = arith.constant dense<0.000000e+00> : vector<2x8x16xf32>
    %194 = tpu.matmul %193, %179, %cst_93 {dimension_numbers = #tpu.dot_dimension_numbers<[2], [1], [1], [2], [0, 0, 0, 1, 1, 2], [0], [0]>} : vector<2x8x8xf32>, vector<2x8x16xf32>, vector<2x8x16xf32> -> vector<2x8x16xf32>
    "tpu.trace_stop"() : () -> ()
    %195 = vector.shape_cast %194 : vector<2x8x16xf32> to vector<16x16xf32>
    %c1_94 = arith.constant 1 : index
    %c1_95 = arith.constant 1 : index
    %c0_96 = arith.constant 0 : index
    %c0_97 = arith.constant 0 : index
    %196 = vector.load %arg6[%c1_94, %c1_95, %c0_96, %c0_97] : memref<2x2x16x32xf32, #tpu.memory_space<vmem>>, vector<1x1x16x32xf32>
    %197 = vector.shape_cast %196 : vector<1x1x16x32xf32> to vector<16x32xf32>
    %cst_98 = arith.constant dense<0.000000e+00> : vector<16x32xf32>
    %198 = tpu.matmul %195, %197, %cst_98 {dimension_numbers = #tpu.dot_dimension_numbers<[1], [0], [0], [1], [0, 0, 1, 1], [], []>} : vector<16x16xf32>, vector<16x32xf32>, vector<16x32xf32> -> vector<16x32xf32>
    %199 = arith.addf %173, %198 : vector<16x32xf32>
    %200 = arith.addf %137, %199 : vector<16x32xf32>
    %c1_99 = arith.constant 1 : index
    %c0_100 = arith.constant 0 : index
    %c0_101 = arith.constant 0 : index
    %201 = vector.load %arg12[%c1_99, %c0_100, %c0_101] : memref<2x1x32xf32, #tpu.memory_space<vmem>>, vector<1x1x32xf32>
    %202 = vector.shape_cast %201 : vector<1x1x32xf32> to vector<1x32xf32>
    %c1_102 = arith.constant 1 : index
    %c0_103 = arith.constant 0 : index
    %c0_104 = arith.constant 0 : index
    %203 = vector.load %arg13[%c1_102, %c0_103, %c0_104] : memref<2x1x32xf32, #tpu.memory_space<vmem>>, vector<1x1x32xf32>
    %204 = vector.shape_cast %203 : vector<1x1x32xf32> to vector<1x32xf32>
    %cst_105 = arith.constant dense<0.000000e+00> : vector<16xf32>
    %205 = vector.multi_reduction <add>, %200, %cst_105 [1] : vector<16x32xf32> to vector<16xf32>
    %206 = vector.shape_cast %205 : vector<16xf32> to vector<16x1xf32>
    %cst_106 = arith.constant 3.200000e+01 : f32
    %207 = vector.broadcast %cst_106 : f32 to vector<16x1xf32>
    %208 = arith.divf %206, %207 : vector<16x1xf32>
    %209 = vector.broadcast %208 : vector<16x1xf32> to vector<16x32xf32>
    %210 = arith.subf %200, %209 : vector<16x32xf32>
    %211 = arith.mulf %210, %210 : vector<16x32xf32>
    %cst_107 = arith.constant dense<0.000000e+00> : vector<16xf32>
    %212 = vector.multi_reduction <add>, %211, %cst_107 [1] : vector<16x32xf32> to vector<16xf32>
    %213 = vector.shape_cast %212 : vector<16xf32> to vector<16x1xf32>
    %cst_108 = arith.constant 3.200000e+01 : f32
    %214 = vector.broadcast %cst_108 : f32 to vector<16x1xf32>
    %215 = arith.divf %213, %214 : vector<16x1xf32>
    %216 = vector.broadcast %208 : vector<16x1xf32> to vector<16x32xf32>
    %217 = arith.subf %200, %216 : vector<16x32xf32>
    %cst_109 = arith.constant 9.99999974E-6 : f32
    %218 = vector.broadcast %cst_109 : f32 to vector<16x1xf32>
    %219 = arith.addf %215, %218 : vector<16x1xf32>
    %220 = math.rsqrt %219 : vector<16x1xf32>
    %221 = vector.broadcast %220 : vector<16x1xf32> to vector<16x32xf32>
    %222 = arith.mulf %217, %221 : vector<16x32xf32>
    %223 = vector.broadcast %202 : vector<1x32xf32> to vector<16x32xf32>
    %224 = arith.mulf %222, %223 : vector<16x32xf32>
    %225 = vector.broadcast %204 : vector<1x32xf32> to vector<16x32xf32>
    %226 = arith.addf %224, %225 : vector<16x32xf32>
    %c1_110 = arith.constant 1 : index
    %c0_111 = arith.constant 0 : index
    %c0_112 = arith.constant 0 : index
    %227 = vector.load %arg8[%c1_110, %c0_111, %c0_112] : memref<2x32x32xf32, #tpu.memory_space<vmem>>, vector<1x32x32xf32>
    %228 = vector.shape_cast %227 : vector<1x32x32xf32> to vector<32x32xf32>
    %cst_113 = arith.constant dense<0.000000e+00> : vector<16x32xf32>
    %229 = tpu.matmul %226, %228, %cst_113 {dimension_numbers = #tpu.dot_dimension_numbers<[1], [0], [0], [1], [0, 0, 1, 1], [], []>} : vector<16x32xf32>, vector<32x32xf32>, vector<16x32xf32> -> vector<16x32xf32>
    %c1_114 = arith.constant 1 : index
    %c0_115 = arith.constant 0 : index
    %c0_116 = arith.constant 0 : index
    %230 = vector.load %arg9[%c1_114, %c0_115, %c0_116] : memref<2x1x32xf32, #tpu.memory_space<vmem>>, vector<1x1x32xf32>
    %231 = vector.shape_cast %230 : vector<1x1x32xf32> to vector<1x32xf32>
    %232 = vector.broadcast %231 : vector<1x32xf32> to vector<16x32xf32>
    %233 = arith.addf %229, %232 : vector<16x32xf32>
    %cst_117 = arith.constant 0.000000e+00 : f32
    %234 = vector.broadcast %cst_117 : f32 to vector<16x32xf32>
    %235 = arith.maximumf %233, %234 : vector<16x32xf32>
    %c1_118 = arith.constant 1 : index
    %c0_119 = arith.constant 0 : index
    %c0_120 = arith.constant 0 : index
    %236 = vector.load %arg10[%c1_118, %c0_119, %c0_120] : memref<2x32x32xf32, #tpu.memory_space<vmem>>, vector<1x32x32xf32>
    %237 = vector.shape_cast %236 : vector<1x32x32xf32> to vector<32x32xf32>
    %cst_121 = arith.constant dense<0.000000e+00> : vector<16x32xf32>
    %238 = tpu.matmul %235, %237, %cst_121 {dimension_numbers = #tpu.dot_dimension_numbers<[1], [0], [0], [1], [0, 0, 1, 1], [], []>} : vector<16x32xf32>, vector<32x32xf32>, vector<16x32xf32> -> vector<16x32xf32>
    %c1_122 = arith.constant 1 : index
    %c0_123 = arith.constant 0 : index
    %c0_124 = arith.constant 0 : index
    %239 = vector.load %arg11[%c1_122, %c0_123, %c0_124] : memref<2x1x32xf32, #tpu.memory_space<vmem>>, vector<1x1x32xf32>
    %240 = vector.shape_cast %239 : vector<1x1x32xf32> to vector<1x32xf32>
    %241 = vector.broadcast %240 : vector<1x32xf32> to vector<16x32xf32>
    %242 = arith.addf %238, %241 : vector<16x32xf32>
    %243 = arith.addf %226, %242 : vector<16x32xf32>
    %c1_125 = arith.constant 1 : index
    %c0_126 = arith.constant 0 : index
    %c0_127 = arith.constant 0 : index
    %244 = vector.load %arg14[%c1_125, %c0_126, %c0_127] : memref<2x1x32xf32, #tpu.memory_space<vmem>>, vector<1x1x32xf32>
    %245 = vector.shape_cast %244 : vector<1x1x32xf32> to vector<1x32xf32>
    %c1_128 = arith.constant 1 : index
    %c0_129 = arith.constant 0 : index
    %c0_130 = arith.constant 0 : index
    %246 = vector.load %arg15[%c1_128, %c0_129, %c0_130] : memref<2x1x32xf32, #tpu.memory_space<vmem>>, vector<1x1x32xf32>
    %247 = vector.shape_cast %246 : vector<1x1x32xf32> to vector<1x32xf32>
    %cst_131 = arith.constant dense<0.000000e+00> : vector<16xf32>
    %248 = vector.multi_reduction <add>, %243, %cst_131 [1] : vector<16x32xf32> to vector<16xf32>
    %249 = vector.shape_cast %248 : vector<16xf32> to vector<16x1xf32>
    %cst_132 = arith.constant 3.200000e+01 : f32
    %250 = vector.broadcast %cst_132 : f32 to vector<16x1xf32>
    %251 = arith.divf %249, %250 : vector<16x1xf32>
    %252 = vector.broadcast %251 : vector<16x1xf32> to vector<16x32xf32>
    %253 = arith.subf %243, %252 : vector<16x32xf32>
    %254 = arith.mulf %253, %253 : vector<16x32xf32>
    %cst_133 = arith.constant dense<0.000000e+00> : vector<16xf32>
    %255 = vector.multi_reduction <add>, %254, %cst_133 [1] : vector<16x32xf32> to vector<16xf32>
    %256 = vector.shape_cast %255 : vector<16xf32> to vector<16x1xf32>
    %cst_134 = arith.constant 3.200000e+01 : f32
    %257 = vector.broadcast %cst_134 : f32 to vector<16x1xf32>
    %258 = arith.divf %256, %257 : vector<16x1xf32>
    %259 = vector.broadcast %251 : vector<16x1xf32> to vector<16x32xf32>
    %260 = arith.subf %243, %259 : vector<16x32xf32>
    %cst_135 = arith.constant 9.99999974E-6 : f32
    %261 = vector.broadcast %cst_135 : f32 to vector<16x1xf32>
    %262 = arith.addf %258, %261 : vector<16x1xf32>
    %263 = math.rsqrt %262 : vector<16x1xf32>
    %264 = vector.broadcast %263 : vector<16x1xf32> to vector<16x32xf32>
    %265 = arith.mulf %260, %264 : vector<16x32xf32>
    %266 = vector.broadcast %245 : vector<1x32xf32> to vector<16x32xf32>
    %267 = arith.mulf %265, %266 : vector<16x32xf32>
    %268 = vector.broadcast %247 : vector<1x32xf32> to vector<16x32xf32>
    %269 = arith.addf %267, %268 : vector<16x32xf32>
    %270 = vector.shape_cast %269 : vector<16x32xf32> to vector<2x8x32xf32>
    %c0_136 = arith.constant 0 : index
    %c0_137 = arith.constant 0 : index
    %271 = vector.load %arg17[%c0_136, %c0_137] : memref<1x3xf32, #tpu.memory_space<vmem>>, vector<1x3xf32>
    %272 = vector.extract_strided_slice %270 {offsets = [0, 0, 0], sizes = [2, 1, 32], strides = [1, 1, 1]} : vector<2x8x32xf32> to vector<2x1x32xf32>
    %273 = vector.shape_cast %272 : vector<2x1x32xf32> to vector<2x32xf32>
    %c0_138 = arith.constant 0 : index
    %c0_139 = arith.constant 0 : index
    %c0_140 = arith.constant 0 : index
    %274 = vector.load %arg16[%c0_138, %c0_139, %c0_140] : memref<8x32x3xf32, #tpu.memory_space<vmem>>, vector<1x32x3xf32>
    %275 = vector.shape_cast %274 : vector<1x32x3xf32> to vector<32x3xf32>
    %cst_141 = arith.constant dense<0.000000e+00> : vector<2x3xf32>
    %276 = tpu.matmul %273, %275, %cst_141 {dimension_numbers = #tpu.dot_dimension_numbers<[1], [0], [0], [1], [0, 0, 1, 1], [], []>} : vector<2x32xf32>, vector<32x3xf32>, vector<2x3xf32> -> vector<2x3xf32>
    %277 = vector.broadcast %271 : vector<1x3xf32> to vector<2x3xf32>
    %278 = arith.addf %277, %276 : vector<2x3xf32>
    %279 = vector.extract_strided_slice %270 {offsets = [0, 1, 0], sizes = [2, 1, 32], strides = [1, 1, 1]} : vector<2x8x32xf32> to vector<2x1x32xf32>
    %280 = vector.shape_cast %279 : vector<2x1x32xf32> to vector<2x32xf32>
    %c1_142 = arith.constant 1 : index
    %c0_143 = arith.constant 0 : index
    %c0_144 = arith.constant 0 : index
    %281 = vector.load %arg16[%c1_142, %c0_143, %c0_144] : memref<8x32x3xf32, #tpu.memory_space<vmem>>, vector<1x32x3xf32>
    %282 = vector.shape_cast %281 : vector<1x32x3xf32> to vector<32x3xf32>
    %cst_145 = arith.constant dense<0.000000e+00> : vector<2x3xf32>
    %283 = tpu.matmul %280, %282, %cst_145 {dimension_numbers = #tpu.dot_dimension_numbers<[1], [0], [0], [1], [0, 0, 1, 1], [], []>} : vector<2x32xf32>, vector<32x3xf32>, vector<2x3xf32> -> vector<2x3xf32>
    %284 = arith.addf %278, %283 : vector<2x3xf32>
    %285 = vector.extract_strided_slice %270 {offsets = [0, 2, 0], sizes = [2, 1, 32], strides = [1, 1, 1]} : vector<2x8x32xf32> to vector<2x1x32xf32>
    %286 = vector.shape_cast %285 : vector<2x1x32xf32> to vector<2x32xf32>
    %c2 = arith.constant 2 : index
    %c0_146 = arith.constant 0 : index
    %c0_147 = arith.constant 0 : index
    %287 = vector.load %arg16[%c2, %c0_146, %c0_147] : memref<8x32x3xf32, #tpu.memory_space<vmem>>, vector<1x32x3xf32>
    %288 = vector.shape_cast %287 : vector<1x32x3xf32> to vector<32x3xf32>
    %cst_148 = arith.constant dense<0.000000e+00> : vector<2x3xf32>
    %289 = tpu.matmul %286, %288, %cst_148 {dimension_numbers = #tpu.dot_dimension_numbers<[1], [0], [0], [1], [0, 0, 1, 1], [], []>} : vector<2x32xf32>, vector<32x3xf32>, vector<2x3xf32> -> vector<2x3xf32>
    %290 = arith.addf %284, %289 : vector<2x3xf32>
    %291 = vector.extract_strided_slice %270 {offsets = [0, 3, 0], sizes = [2, 1, 32], strides = [1, 1, 1]} : vector<2x8x32xf32> to vector<2x1x32xf32>
    %292 = vector.shape_cast %291 : vector<2x1x32xf32> to vector<2x32xf32>
    %c3 = arith.constant 3 : index
    %c0_149 = arith.constant 0 : index
    %c0_150 = arith.constant 0 : index
    %293 = vector.load %arg16[%c3, %c0_149, %c0_150] : memref<8x32x3xf32, #tpu.memory_space<vmem>>, vector<1x32x3xf32>
    %294 = vector.shape_cast %293 : vector<1x32x3xf32> to vector<32x3xf32>
    %cst_151 = arith.constant dense<0.000000e+00> : vector<2x3xf32>
    %295 = tpu.matmul %292, %294, %cst_151 {dimension_numbers = #tpu.dot_dimension_numbers<[1], [0], [0], [1], [0, 0, 1, 1], [], []>} : vector<2x32xf32>, vector<32x3xf32>, vector<2x3xf32> -> vector<2x3xf32>
    %296 = arith.addf %290, %295 : vector<2x3xf32>
    %297 = vector.extract_strided_slice %270 {offsets = [0, 4, 0], sizes = [2, 1, 32], strides = [1, 1, 1]} : vector<2x8x32xf32> to vector<2x1x32xf32>
    %298 = vector.shape_cast %297 : vector<2x1x32xf32> to vector<2x32xf32>
    %c4 = arith.constant 4 : index
    %c0_152 = arith.constant 0 : index
    %c0_153 = arith.constant 0 : index
    %299 = vector.load %arg16[%c4, %c0_152, %c0_153] : memref<8x32x3xf32, #tpu.memory_space<vmem>>, vector<1x32x3xf32>
    %300 = vector.shape_cast %299 : vector<1x32x3xf32> to vector<32x3xf32>
    %cst_154 = arith.constant dense<0.000000e+00> : vector<2x3xf32>
    %301 = tpu.matmul %298, %300, %cst_154 {dimension_numbers = #tpu.dot_dimension_numbers<[1], [0], [0], [1], [0, 0, 1, 1], [], []>} : vector<2x32xf32>, vector<32x3xf32>, vector<2x3xf32> -> vector<2x3xf32>
    %302 = arith.addf %296, %301 : vector<2x3xf32>
    %303 = vector.extract_strided_slice %270 {offsets = [0, 5, 0], sizes = [2, 1, 32], strides = [1, 1, 1]} : vector<2x8x32xf32> to vector<2x1x32xf32>
    %304 = vector.shape_cast %303 : vector<2x1x32xf32> to vector<2x32xf32>
    %c5 = arith.constant 5 : index
    %c0_155 = arith.constant 0 : index
    %c0_156 = arith.constant 0 : index
    %305 = vector.load %arg16[%c5, %c0_155, %c0_156] : memref<8x32x3xf32, #tpu.memory_space<vmem>>, vector<1x32x3xf32>
    %306 = vector.shape_cast %305 : vector<1x32x3xf32> to vector<32x3xf32>
    %cst_157 = arith.constant dense<0.000000e+00> : vector<2x3xf32>
    %307 = tpu.matmul %304, %306, %cst_157 {dimension_numbers = #tpu.dot_dimension_numbers<[1], [0], [0], [1], [0, 0, 1, 1], [], []>} : vector<2x32xf32>, vector<32x3xf32>, vector<2x3xf32> -> vector<2x3xf32>
    %308 = arith.addf %302, %307 : vector<2x3xf32>
    %309 = vector.extract_strided_slice %270 {offsets = [0, 6, 0], sizes = [2, 1, 32], strides = [1, 1, 1]} : vector<2x8x32xf32> to vector<2x1x32xf32>
    %310 = vector.shape_cast %309 : vector<2x1x32xf32> to vector<2x32xf32>
    %c6 = arith.constant 6 : index
    %c0_158 = arith.constant 0 : index
    %c0_159 = arith.constant 0 : index
    %311 = vector.load %arg16[%c6, %c0_158, %c0_159] : memref<8x32x3xf32, #tpu.memory_space<vmem>>, vector<1x32x3xf32>
    %312 = vector.shape_cast %311 : vector<1x32x3xf32> to vector<32x3xf32>
    %cst_160 = arith.constant dense<0.000000e+00> : vector<2x3xf32>
    %313 = tpu.matmul %310, %312, %cst_160 {dimension_numbers = #tpu.dot_dimension_numbers<[1], [0], [0], [1], [0, 0, 1, 1], [], []>} : vector<2x32xf32>, vector<32x3xf32>, vector<2x3xf32> -> vector<2x3xf32>
    %314 = arith.addf %308, %313 : vector<2x3xf32>
    %315 = vector.extract_strided_slice %270 {offsets = [0, 7, 0], sizes = [2, 1, 32], strides = [1, 1, 1]} : vector<2x8x32xf32> to vector<2x1x32xf32>
    %316 = vector.shape_cast %315 : vector<2x1x32xf32> to vector<2x32xf32>
    %c7 = arith.constant 7 : index
    %c0_161 = arith.constant 0 : index
    %c0_162 = arith.constant 0 : index
    %317 = vector.load %arg16[%c7, %c0_161, %c0_162] : memref<8x32x3xf32, #tpu.memory_space<vmem>>, vector<1x32x3xf32>
    %318 = vector.shape_cast %317 : vector<1x32x3xf32> to vector<32x3xf32>
    %cst_163 = arith.constant dense<0.000000e+00> : vector<2x3xf32>
    %319 = tpu.matmul %316, %318, %cst_163 {dimension_numbers = #tpu.dot_dimension_numbers<[1], [0], [0], [1], [0, 0, 1, 1], [], []>} : vector<2x32xf32>, vector<32x3xf32>, vector<2x3xf32> -> vector<2x3xf32>
    %320 = arith.addf %314, %319 : vector<2x3xf32>
    %321 = arith.negf %320 : vector<2x3xf32>
    %322 = math.exp %321 : vector<2x3xf32>
    %cst_164 = arith.constant 1.000000e+00 : f32
    %323 = vector.broadcast %cst_164 : f32 to vector<2x3xf32>
    %324 = arith.addf %323, %322 : vector<2x3xf32>
    %325 = arith.divf %323, %324 : vector<2x3xf32>
    %c0_165 = arith.constant 0 : index
    %c0_166 = arith.constant 0 : index
    %326 = vector.load %arg18[%c0_165, %c0_166] : memref<2x3xf32, #tpu.memory_space<vmem>>, vector<2x3xf32>
    tpu.vector_store %arg18[%c0_165, %c0_166], %325 {strides = array<i32>} : memref<2x3xf32, #tpu.memory_space<vmem>>, vector<2x3xf32>,
    return
  }
}

</mosaic_0001>

<bundles_post_ra>
// kernel: forward.1
= control target key start
LH: loop header
LB: loop body
LE: loop exit
PB: predicated region body
PF: predicated region fallthrough
CT: control target
= control target key end

     0   :  { %s4696_s0 = inlined_call_operand.vmem [shape: f32[16,13], index: 0, kind: input, shape index: {}]   ;;  %s4697_s1 = inlined_call_operand.hbm [shape: f32[8,8], index: 1, kind: input, shape index: {}]   ;;  %s4698_s2 = inlined_call_operand.vmem [shape: f32[13,32], index: 2, kind: input, shape index: {}]   ;;  %s4699_s3 = inlined_call_operand.vmem [shape: f32[16,32], index: 3, kind: input, shape index: {}]   ;;  %s4700_s4 = inlined_call_operand.vmem [shape: f32[2,32,96], index: 4, kind: input, shape index: {}]   ;;  %s4701_s5 = inlined_call_operand.vmem [shape: f32[2,1,96], index: 5, kind: input, shape index: {}]   ;;  %s4702_s6 = inlined_call_operand.vmem [shape: f32[2,2,16,32], index: 6, kind: input, shape index: {}]   ;;  %s4703_s7 = inlined_call_operand.vmem [shape: f32[2,1,32], index: 7, kind: input, shape index: {}, may-alias: {7,13,15}]   ;;  %s4704_s8 = inlined_call_operand.hbm [shape: f32[2,32,32], index: 8, kind: input, shape index: {}]   ;;  %s4705_s9 = inlined_call_operand.vmem [shape: f32[2,1,32], index: 9, kind: input, shape index: {}]   ;;  %s4706_s10 = inlined_call_operand.hbm [shape: f32[2,32,32], index: 10, kind: input, shape index: {}]   ;;  %s4707_s11 = inlined_call_operand.vmem [shape: f32[2,1,32], index: 11, kind: input, shape index: {}]   ;;  %s4708_s12 = inlined_call_operand.vmem [shape: f32[2,1,32], index: 12, kind: input, shape index: {}, may-alias: {12,14}]   ;;  %s4709_s13 = inlined_call_operand.vmem [shape: f32[2,1,32], index: 13, kind: input, shape index: {}, may-alias: {7,13,15}]   ;;  %s4710_s14 = inlined_call_operand.vmem [shape: f32[2,1,32], index: 14, kind: input, shape index: {}, may-alias: {12,14}]   ;;  %s4711_s15 = inlined_call_operand.vmem [shape: f32[2,1,32], index: 15, kind: input, shape index: {}, may-alias: {7,13,15}]   ;;  %s4712_s16 = inlined_call_operand.hbm [shape: f32[8,32,3], index: 16, kind: input, shape index: {}]   ;;  %s4713_s17 = inlined_call_operand.vmem [shape: f32[1,3], index: 17, kind: input, shape index: {}]   ;;  %s4714_s18 = inlined_call_operand.hbm [shape: f32[2,3], index: 18, kind: output, shape index: {}]  }
   0x1   :  { %4719 = sst [smem:[#allocation15_spill]] %s4696_s0 }
   0x2   :  { %4720 = sst [smem:[#allocation16_spill]] %s4697_s1 }
   0x3   :  { %4721 = sst [smem:[#allocation17_spill]] %s4698_s2 }
   0x4   :  { %4722 = sst [smem:[#allocation18_spill]] %s4713_s17 }
   0x5   :  { %4723 = sst [smem:[#allocation19_spill]] %s4714_s18 }
   0x6   :  { %23 = vsyncpa [#allocation3], 0 }
   0x7   :  { %24 = vsyncpa [#allocation6], 0 }
   0x8   :  { %25 = vsyncpa [#allocation9], 0 }
   0x9   :  { %26 = vsyncpa [#allocation4], 0  ;;  %s4129_s27 = smov [#allocation5]   ;;  %s4011_s0 = scalar_lea.hbm %s4704_s8, 1024 }
   0xa   :  { %s56_s28 = sshll.u32 %s4129_s27, 4  ;;  %p4012_p0 = scmp.ne.s32.totalorder %s4704_s8, %s4011_s0  ;;  %s57_s28 = int_to_ptr.vmem [resolvable:$true] %s56_s28 }
   0xb   :  { %p4015_p1 = scmp.lt.u32.totalorder %s4011_s0, %s4704_s8 }
   0xd   :  { %p4017_p2 = pnand %p4015_p1, %p4012_p0 }
   0xf   :  { %4020 = shalt.err (!%p4017_p2)
}
  0x10   :  { %s4021_s22 = scalar_lea.vmem %s57_s28, 1024  ;;  %p4026_p4 = scmp.lt.s32.totalorder %s57_s28, %s57_s28 }
  0x11   :  { %p4022_p3 = scmp.ne.s32.totalorder %s57_s28, %s4021_s22  ;;  %p4027_p5 = scmp.lt.s32.totalorder %s4021_s22, %s4021_s22 }
  0x13   :  { %p4028_p6 = por %p4027_p5, %p4026_p4 }
  0x15   :  { %p4029_p7 = pnand %p4028_p6, %p4022_p3 }
  0x17   :  { %4032 = shalt.err (!%p4029_p7)
}
  0x18   :  { %s4130_s2 = smov 128   ;;  %s4131_s23 = smov 8  }
  0x19   :  { %62 = dma.hbm_to_vmem [thread:$0]  %s4704_s8, 1024, %s57_s28, [#allocation6], %s4130_s2, %s4130_s2, %s4131_s23  }
  0x1a   :  { %s4132_s26 = smov [#allocation2]   ;;  %s4133_s29 = smov [#allocation7]  }
  0x1b   :  { %s35_s27 = sshll.u32 %s4132_s26, 4  ;;  %s70_s30 = sshll.u32 %s4133_s29, 4  ;;  %s36_s27 = int_to_ptr.vmem [resolvable:$true] %s35_s27  ;;  %s71_s30 = int_to_ptr.vmem [resolvable:$true] %s70_s30 }
  0x1c   :  { %s4724_s1 = sld [smem:[#allocation16_spill]] }
  0x22   :  { %s4033_s20 = scalar_lea.hbm %s4724_s1, 128 }
  0x23   :  { %p4034_p8 = scmp.ne.s32.totalorder %s4724_s1, %s4033_s20  ;;  %p4037_p9 = scmp.lt.u32.totalorder %s4033_s20, %s4724_s1 }
  0x25   :  { %p4039_p10 = pnand %p4037_p9, %p4034_p8 }
  0x27   :  { %4042 = shalt.err (!%p4039_p10)
}
  0x28   :  { %s4043_s8 = scalar_lea.vmem %s36_s27, 128  ;;  %p4048_p12 = scmp.lt.s32.totalorder %s36_s27, %s36_s27 }
  0x29   :  { %p4044_p11 = scmp.ne.s32.totalorder %s36_s27, %s4043_s8  ;;  %p4049_p13 = scmp.lt.s32.totalorder %s4043_s8, %s4043_s8 }
  0x2b   :  { %p4050_p0 = por %p4049_p13, %p4048_p12 }
  0x2d   :  { %p4051_p1 = pnand %p4050_p0, %p4044_p11 }
  0x2f   :  { %4054 = shalt.err (!%p4051_p1)
}
  0x30   :  { %38 = dma.hbm_to_vmem [thread:$0]  %s4724_s1, 128, %s36_s27, [#allocation3]  }
  0x31   :  { %s4055_s29 = scalar_lea.hbm %s4706_s10, 1024 }
  0x32   :  { %p4056_p2 = scmp.ne.s32.totalorder %s4706_s10, %s4055_s29  ;;  %p4059_p3 = scmp.lt.u32.totalorder %s4055_s29, %s4706_s10 }
  0x34   :  { %p4061_p4 = pnand %p4059_p3, %p4056_p2 }
  0x36   :  { %4064 = shalt.err (!%p4061_p4)
}
  0x37   :  { %s4065_s20 = scalar_lea.vmem %s71_s30, 1024  ;;  %p4070_p6 = scmp.lt.s32.totalorder %s71_s30, %s71_s30 }
  0x38   :  { %p4066_p5 = scmp.ne.s32.totalorder %s71_s30, %s4065_s20  ;;  %p4071_p7 = scmp.lt.s32.totalorder %s4065_s20, %s4065_s20 }
  0x3a   :  { %p4072_p8 = por %p4071_p7, %p4070_p6 }
  0x3c   :  { %p4073_p9 = pnand %p4072_p8, %p4066_p5 }
  0x3e   :  { %4076 = shalt.err (!%p4073_p9)
}
  0x3f   :  { %76 = dma.hbm_to_vmem [thread:$0]  %s4706_s10, 1024, %s71_s30, [#allocation6], %s4130_s2, %s4130_s2, %s4131_s23  }
  0x40   :  { %s4134_s21 = smov [#allocation8]   ;;  %s4077_s24 = scalar_lea.hbm %s4712_s16, 4096 }
  0x41   :  { %s92_s22 = sshll.u32 %s4134_s21, 4  ;;  %p4078_p10 = scmp.ne.s32.totalorder %s4712_s16, %s4077_s24  ;;  %s93_s22 = int_to_ptr.vmem [resolvable:$true] %s92_s22 }
  0x42   :  { %p4081_p11 = scmp.lt.u32.totalorder %s4077_s24, %s4712_s16 }
  0x44   :  { %p4083_p12 = pnand %p4081_p11, %p4078_p10 }
  0x46   :  { %4086 = shalt.err (!%p4083_p12)
}
  0x47   :  { %s4087_s18 = scalar_lea.vmem %s93_s22, 4096  ;;  %p4092_p0 = scmp.lt.s32.totalorder %s93_s22, %s93_s22 }
  0x48   :  { %p4088_p13 = scmp.ne.s32.totalorder %s93_s22, %s4087_s18  ;;  %p4093_p1 = scmp.lt.s32.totalorder %s4087_s18, %s4087_s18 }
  0x4a   :  { %p4094_p2 = por %p4093_p1, %p4092_p0 }
  0x4c   :  { %p4095_p3 = pnand %p4094_p2, %p4088_p13 }
  0x4e   :  { %4098 = shalt.err (!%p4095_p3)
}
  0x4f   :  { %98 = dma.hbm_to_vmem [thread:$0]  %s4712_s16, 4096, %s93_s22, [#allocation9], %s4130_s2, %s4130_s2, %s4131_s23  }
  0x50   :  { %4121 = dma.done.wait [#allocation3], 128  }
  0x51   :  { %4122 = vsyncadd [#allocation3], 4294967168 }
  0x52   :  { %4123 = dma.done.wait [#allocation6], 2048  }
  0x53   :  { %4124 = vsyncadd [#allocation6], 4294965248 }
  0x54   :  { %4125 = dma.done.wait [#allocation9], 4096  }
  0x55   :  { %4126 = vsyncadd [#allocation9], 4294963200  ;;  %vm127_vm0 = vcmask 1044480   ;;  %vm120_vm1 = vcmask 105472   ;;  %vm4135_vm2 = vmmov 1   ;;  %s4725_s20 = sld [smem:[#allocation17_spill]] }
  0x56   :  { %vm3803_vm3 = vmpackc.low %vm127_vm0, %vm4135_vm2  ;;  %s4726_s2 = sld [smem:[#allocation15_spill]]  ;;  %v206_v4 = vld [vmem:[%s4700_s4] sm:$0xff]  ;;  %v207_v5 = vld [vmem:[%s4700_s4 + $0x8] sm:$0xff]  ;;  %vm217_vm4 = vcmask 261120   ;;  %v4136_v17 = vmov 0.0   ;;  %vm4137_vm5 = vmmov 0  }
  0x57   :  { %v3808_v6 = vpack.c.bf16 %v207_v5, %v206_v4  ;;  %v208_v8 = vld [vmem:[%s4700_s4 + $0x10] sm:$0xff]  ;;  %v209_v9 = vld [vmem:[%s4700_s4 + $0x18] sm:$0xff]  ;;  %v118_v11 = vld [vmem:[%s4699_s3] sm:$0xff]  ;;  %3551 = vmatprep.subr.mxu0 %v4136_v17  ;;  %3553 = vmatprep.mubr.msk.f32.mxu0 %vm4137_vm5, %v4136_v17  ;;  %s4138_s27 = smov 96   ;;  %vm303_vm6 = vcmask 130048   ;;  %vm455_vm7 = vcmask 64512  }
  0x58   :  { %v3812_v10 = vpack.c.bf16 %v209_v9, %v208_v8  ;;  %v119_v12 = vld [vmem:[%s4699_s3 + $0x8] sm:$0xff]  ;;  %v3317_v18 = vld [vmem:[%s4701_s5] ss:$0 sm:$0xff]  ;;  %s4139_s1 = smov 64   ;;  %s4140_s21 = smov 112   ;;  %vm2642_vm8 = vcmask 1041409  }
  0x59   :  { %v4364_v25 = vld [vmem:[#allocation2] sm:$0xff]  ;;  %s4141_s16 = smov 80   ;;  %v631_v46 = vld [vmem:[%s4702_s6 + $0x8] sm:$0xff]  ;;  %s4142_s28 = smov 48   ;;  %vm3295_vm9 = vcmask 17408  }
  0x5a   :  { %v630_v45 = vld [vmem:[%s4702_s6] sm:$0xff]  ;;  %s4727_s18 = sld [smem:[#allocation18_spill]]  ;;  %s4144_s10 = smov [#allocation10]  }
  0x5b   :  { %v116_v0 = vld [vmem:[%s4725_s20] sm:$0xff]  ;;  %v117_v1 = vld [vmem:[%s4725_s20 + $0x8] sm:$0x1f]  ;;  %v3816_v47 = vpack.c.bf16 %v631_v46, %v630_v45  ;;  %s3303_s30 = sshll.u32 %s4144_s10, 4  ;;  %s3304_s30 = int_to_ptr.vmem [resolvable:$true] %s3303_s30 }
  0x5c   :  { %v113_v2 = vld [vmem:[%s4726_s2] sm:$0xff]  ;;  %v3802_v3 = vpack.c.bf16 %v117_v1, %v116_v0  ;;  %v114_v7 = vld [vmem:[%s4726_s2 + $0x8] sm:$0xff]  ;;  %p4104_p5 = scmp.lt.s32.totalorder %s3304_s30, %s3304_s30 }
  0x5d   :  { %3537 = vmatprep.mubr.msk.f32.mxu1 %vm120_vm1, %v113_v2 }
  0x5e   :  { %3804 = vmatprep.subr.msk.bf16.mxu1 %vm3803_vm3, %v3802_v3 }
  0x5f   :  { %3807 = vmatpush3.bf16.msk.msra.mxu1 %vm3803_vm3, %v3802_v3 }
  0x60   :  { %3809 = vmatprep.subr.bf16.mxu1 %v3808_v6 }
  0x62   :  { %3538 = vmatmul.mubr.msk.f32.vlgmr.msra.gmra.mrb[0].mxu1 %vm120_vm1, %v114_v7 }
  0x63   :  { %3811 = vmatpush3.bf16.msra.mxu1 %v3808_v6 }
  0x64   :  { %3813 = vmatprep.subr.bf16.mxu1 %v3812_v10 }
  0x67   :  { %3815 = vmatpush3.bf16.msra.mxu1 %v3812_v10 }
  0x68   :  { %3561 = vmatprep.subr.mxu1 %v4136_v17 }
 0x135   :  { %v3539_v13 = vpop.f32.mrb[0].mxu1 }
 0x136   :  { %v197_v14 = vpop.f32.mrb[1].mxu1  ;;  %v4329_v16 = vadd.f32 %v3539_v13, %v119_v12 }
 0x137   :  { %v4327_v15 = vadd.f32 %v197_v14, %v118_v11 }
 0x139   :  { %3548 = vmatprep.mubr.msk.f32.mxu1 %vm217_vm4, %v4327_v15 }
 0x13a   :  { %3549 = vmatmul.mubr.msk.f32.vlgmr.msra.gmra.mrb[2].mxu1 %vm217_vm4, %v4329_v16 }
 0x13b   :  { %3563 = vmatprep.mubr.msk.f32.mxu1 %vm4137_vm5, %v4136_v17 }
 0x20d   :  { %v3550_v19 = vpop.f32.mrb[2].mxu1 }
 0x20e   :  { %v290_v20 = vpop.f32.mrb[3].mxu1  ;;  %v4348_v22 = vadd.f32 %v3550_v19, %v3317_v18 }
 0x20f   :  { %v4344_v21 = vadd.f32 %v3317_v18, %v290_v20 }
 0x211   :  { %301 = vrot.lane.b32.xlu0 %v4344_v21, %s4138_s27 }
 0x215   :  { %379 = vrot.lane.b32.xlu0 %v4348_v22, %s4138_s27 }
 0x283   :  { %v302_v23 = vpop.permute.xlu0 %301 }
 0x284   :  { %3552 = vmatpush3.xpose.msk.msra.mxu0 %vm303_vm6, %v302_v23 }
 0x285   :  { %3556 = vmatprep.subr.mxu0 %v4136_v17 }
 0x287   :  { %3554 = vmatmul.mubr.msk.f32.vlgmr.msra.gmra.mrb[0].mxu0 %vm303_vm6, %v4344_v21  ;;  %v380_v24 = vpop.permute.xlu0 %379 }
 0x288   :  { %3557 = vmatpush3.xpose.msk.msra.mxu0 %vm303_vm6, %v380_v24  ;;  %3558 = vmatprep.mubr.msk.f32.mxu0 %vm4137_vm5, %v4136_v17 }
 0x289   :  { %3566 = vmatprep.subr.mxu0 %v4136_v17 }
 0x28b   :  { %3559 = vmatmul.mubr.msk.f32.vlgmr.msra.gmra.mrb[2].mxu0 %vm303_vm6, %v4348_v22 }
 0x28c   :  { %3568 = vmatprep.mubr.msk.f32.mxu0 %vm4137_vm5, %v4136_v17 }
 0x35a   :  { %v374_v26 = vpop.f32.mrb[0].mxu0 }
 0x35b   :  { %v375_v27 = vadd.f32 %v374_v26, %v4364_v25  ;;  %v3555_v28 = vpop.f32.mrb[1].mxu0 }
 0x35d   :  { %v456_v29 = vsel %vm455_vm7, %v375_v27, -inf }
 0x35e   :  { %457 = vmax.xlane.f32.xlu1 %v456_v29  ;;  %v451_v30 = vpop.f32.mrb[2].mxu0 }
 0x35f   :  { %v452_v31 = vadd.f32 %v451_v30, %v4364_v25  ;;  %v3560_v32 = vpop.f32.mrb[3].mxu0  ;;  %v3336_v30 = vld [vmem:[%s4702_s6 + $0x18] sm:$0xff] }
 0x361   :  { %v459_v33 = vsel %vm455_vm7, %v452_v31, -inf }
 0x362   :  { %460 = vmax.xlane.f32.xlu1 %v459_v33 }
 0x373   :  { %478 = vrot.lane.b32.xlu1 %v4344_v21, %s4139_s1 }
 0x3eb   :  { %v458_v34 = vpop.xlane.xlu1 %457 }
 0x3ec   :  { %v462_v35 = vsub.f32 %v375_v27, %v458_v34 }
 0x3ee   :  { %v464_v36 = vmul.f32 1.442695, %v462_v35 }
 0x3ef   :  { %v461_v37 = vpop.xlane.xlu1 %460 }
 0x3f0   :  { %3959 = vpow2.f32 %v464_v36  ;;  %v463_v38 = vsub.f32 %v452_v31, %v461_v37  ;;  %v3328_v36 = vld [vmem:[%s4703_s7] ss:$0 sm:$0xff] }
 0x3f2   :  { %v466_v39 = vmul.f32 1.442695, %v463_v38 }
 0x3f3   :  { %v479_v40 = vpop.permute.xlu1 %478 }
 0x3f4   :  { %3961 = vpow2.f32 %v466_v39  ;;  %3562 = vmatpush3.msra.mxu1 %v479_v40 }
 0x3f5   :  { %3817 = vmatprep.subr.bf16.mxu1 %v3816_v47 }
 0x3fa   :  { %v3960_v41 = vpop.eup %3959 }
 0x3fb   :  { %v468_v42 = vsel %vm455_vm7, %v3960_v41, 0.0 }
 0x3fc   :  { %469 = vadd.xlane.f32.xlu0 %v468_v42 }
 0x3fe   :  { %v3962_v43 = vpop.eup %3961 }
 0x3ff   :  { %v471_v44 = vsel %vm455_vm7, %v3962_v43, 0.0 }
 0x400   :  { %472 = vadd.xlane.f32.xlu1 %v471_v44 }
 0x411   :  { %554 = vrot.lane.b32.xlu1 %v4348_v22, %s4139_s1 }
 0x412   :  { %721 = vrot.lane.b32.xlu0 %v4344_v21, %s4140_s21 }
 0x415   :  { %723 = vrot.lane.b32.xlu1 %v4344_v21, %s4141_s16 }
 0x419   :  { %801 = vrot.lane.b32.xlu1 %v4348_v22, %s4141_s16 }
 0x41d   :  { %799 = vrot.lane.b32.xlu1 %v4348_v22, %s4140_s21 }
 0x489   :  { %v470_v48 = vpop.xlane.xlu0 %469 }
 0x48a   :  { %3963 = vrcp.f32 %v470_v48 }
 0x48d   :  { %v473_v49 = vpop.xlane.xlu1 %472  ;;  %v722_v56 = vpop.permute.xlu0 %721 }
 0x48e   :  { %3965 = vrcp.f32 %v473_v49 }
 0x491   :  { %v555_v50 = vpop.permute.xlu1 %554 }
 0x492   :  { %3567 = vmatpush3.msra.mxu0 %v555_v50 }
 0x493   :  { %3578 = vmatprep.subr.mxu0 %v4136_v17 }
 0x494   :  { %v3964_v51 = vpop.eup %3963 }
 0x495   :  { %v476_v52 = vmul.f32 %v3964_v51, %v3960_v41  ;;  %v724_v55 = vpop.permute.xlu1 %723 }
 0x497   :  { %3564 = vmatmul.mubr.msk.f32.vlgmr.msra.gmra.mrb[4].mxu1 %vm455_vm7, %v476_v52 }
 0x498   :  { %v3966_v53 = vpop.eup %3965  ;;  %3819 = vmatpush3.bf16.msra.mxu1 %v3816_v47 }
 0x499   :  { %v477_v54 = vmul.f32 %v3966_v53, %v3962_v43  ;;  %3583 = vmatprep.subr.mxu1 %v4136_v17  ;;  %v802_v59 = vpop.permute.xlu1 %801 }
 0x49b   :  { %3569 = vmatmul.mubr.msk.f32.vlgmr.msra.gmra.mrb[4].mxu0 %vm455_vm7, %v477_v54  ;;  %v1185_v54 = vld [vmem:[#allocation5 + $0x8] sm:$0xff] }
 0x49c   :  { %3579 = vmatpush3.xpose.msk.msra.mxu0 %vm303_vm6, %v724_v55  ;;  %3580 = vmatprep.mubr.msk.f32.mxu0 %vm4137_vm5, %v4136_v17 }
 0x49d   :  { %3588 = vmatprep.subr.mxu0 %v4136_v17  ;;  %v800_v62 = vpop.permute.xlu1 %799 }
 0x49f   :  { %3581 = vmatmul.mubr.msk.f32.vlgmr.msra.gmra.mrb[6].mxu0 %vm303_vm6, %v722_v56  ;;  %v1186_v56 = vld [vmem:[#allocation5 + $0x10] sm:$0xff] }
 0x4a0   :  { %3590 = vmatprep.mubr.msk.f32.mxu0 %vm4137_vm5, %v4136_v17 }
 0x56a   :  { %v550_v57 = vpop.f32.mrb[4].mxu1 }
 0x56b   :  { %v3565_v58 = vpop.f32.mrb[5].mxu1  ;;  %3575 = vmatprep.mubr.msk.f32.mxu1 %vm303_vm6, %v550_v57  ;;  %v1187_v57 = vld [vmem:[#allocation5 + $0x18] sm:$0xff] }
 0x56c   :  { %v3828_v58 = vpack.c.bf16 %v1187_v57, %v1186_v56 }
 0x56e   :  { %v626_v60 = vpop.f32.mrb[4].mxu0 }
 0x56f   :  { %v3570_v61 = vpop.f32.mrb[5].mxu0  ;;  %3576 = vmatmul.mubr.msk.f32.vlgmr.msra.gmra.mrb[6].mxu1 %vm303_vm6, %v626_v60  ;;  %v1279_v60 = vld [vmem:[#allocation7 + $0x8] sm:$0xff] }
 0x570   :  { %3584 = vmatpush3.xpose.msk.msra.mxu1 %vm303_vm6, %v802_v59  ;;  %3585 = vmatprep.mubr.msk.f32.mxu1 %vm4137_vm5, %v4136_v17  ;;  %v1278_v59 = vld [vmem:[#allocation7] sm:$0xff] }
 0x571   :  { %3593 = vmatprep.subr.mxu1 %v4136_v17  ;;  %v3832_v61 = vpack.c.bf16 %v1279_v60, %v1278_v59 }
 0x572   :  { %v795_v63 = vpop.f32.mrb[6].mxu0 }
 0x573   :  { %v796_v0 = vadd.f32 %v795_v63, %v4364_v25  ;;  %v3582_v1 = vpop.f32.mrb[7].mxu0  ;;  %3586 = vmatmul.mubr.msk.f32.vlgmr.msra.gmra.mrb[8].mxu1 %vm303_vm6, %v800_v62 }
 0x574   :  { %3595 = vmatprep.mubr.msk.f32.mxu1 %vm4137_vm5, %v4136_v17 }
 0x575   :  { %v877_v2 = vsel %vm455_vm7, %v796_v0, -inf }
 0x576   :  { %878 = vmax.xlane.f32.xlu1 %v877_v2 }
 0x603   :  { %v879_v3 = vpop.xlane.xlu1 %878 }
 0x604   :  { %v883_v4 = vsub.f32 %v796_v0, %v879_v3 }
 0x606   :  { %v885_v5 = vmul.f32 1.442695, %v883_v4 }
 0x608   :  { %3967 = vpow2.f32 %v885_v5  ;;  %v3339_v5 = vld [vmem:[%s4708_s12] ss:$0 sm:$0xff] }
 0x612   :  { %v3968_v6 = vpop.eup %3967 }
 0x613   :  { %v889_v7 = vsel %vm455_vm7, %v3968_v6, 0.0 }
 0x614   :  { %890 = vadd.xlane.f32.xlu1 %v889_v7 }
 0x646   :  { %v873_v8 = vpop.f32.mrb[8].mxu1 }
 0x647   :  { %v874_v9 = vadd.f32 %v873_v8, %v4364_v25  ;;  %v3587_v10 = vpop.f32.mrb[9].mxu1 }
 0x649   :  { %v880_v11 = vsel %vm455_vm7, %v874_v9, -inf }
 0x64a   :  { %881 = vmax.xlane.f32.xlu0 %v880_v11 }
 0x660   :  { %975 = vrot.lane.b32.xlu0 %v4348_v22, %s4142_s28 }
 0x6a1   :  { %v891_v23 = vpop.xlane.xlu1 %890 }
 0x6d7   :  { %v882_v12 = vpop.xlane.xlu0 %881 }
 0x6d8   :  { %v884_v13 = vsub.f32 %v874_v9, %v882_v12  ;;  %v3340_v9 = vld [vmem:[%s4709_s13] ss:$0 sm:$0xff] }
 0x6da   :  { %v887_v14 = vmul.f32 1.442695, %v884_v13 }
 0x6db   :  { %v976_v18 = vpop.permute.xlu0 %975 }
 0x6dc   :  { %3969 = vpow2.f32 %v887_v14  ;;  %3594 = vmatpush3.msra.mxu1 %v976_v18  ;;  %v1280_v14 = vld [vmem:[#allocation7 + $0x10] sm:$0xff]  ;;  %v1281_v18 = vld [vmem:[#allocation7 + $0x18] sm:$0xff] }
 0x6dd   :  { %3971 = vrcp.f32 %v891_v23 }
 0x6e6   :  { %v3970_v19 = vpop.eup %3969 }
 0x6e7   :  { %v892_v20 = vsel %vm455_vm7, %v3970_v19, 0.0  ;;  %v3972_v26 = vpop.eup %3971 }
 0x6e8   :  { %893 = vadd.xlane.f32.xlu1 %v892_v20  ;;  %v897_v27 = vmul.f32 %v3972_v26, %v3968_v6  ;;  %v3341_v20 = vld [vmem:[%s4705_s9] ss:$0 sm:$0xff] }
 0x6f9   :  { %899 = vrot.lane.b32.xlu1 %v4344_v21, %s4142_s28  ;;  %v3335_v21 = vld [vmem:[%s4702_s6 + $0x10] sm:$0xff] }
 0x6fa   :  { %v3820_v31 = vpack.c.bf16 %v3336_v30, %v3335_v21 }
 0x6fc   :  { %3821 = vmatprep.subr.bf16.mxu1 %v3820_v31 }
 0x775   :  { %v894_v24 = vpop.xlane.xlu1 %893 }
 0x776   :  { %3973 = vrcp.f32 %v894_v24 }
 0x779   :  { %v900_v22 = vpop.permute.xlu1 %899 }
 0x77a   :  { %3589 = vmatpush3.msra.mxu0 %v900_v22 }
 0x77b   :  { %3591 = vmatmul.mubr.msk.f32.vlgmr.msra.gmra.mrb[8].mxu0 %vm455_vm7, %v897_v27  ;;  %3643 = vmatprep.subr.mxu0 %v4136_v17 }
 0x77c   :  { %3645 = vmatprep.mubr.msk.f32.mxu0 %vm4137_vm5, %v4136_v17 }
 0x780   :  { %v3974_v28 = vpop.eup %3973 }
 0x781   :  { %v898_v29 = vmul.f32 %v3974_v28, %v3970_v19  ;;  %v3836_v19 = vpack.c.bf16 %v1281_v18, %v1280_v14 }
 0x783   :  { %3596 = vmatmul.mubr.msk.f32.vlgmr.msra.gmra.mrb[10].mxu1 %vm455_vm7, %v898_v29  ;;  %v3344_v29 = vld [vmem:[%s4707_s11] ss:$0 sm:$0xff] }
 0x784   :  { %3823 = vmatpush3.bf16.msra.mxu1 %v3820_v31 }
 0x84e   :  { %v971_v32 = vpop.f32.mrb[8].mxu0 }
 0x84f   :  { %v3592_v33 = vpop.f32.mrb[9].mxu0  ;;  %3602 = vmatprep.mubr.msk.f32.mxu1 %vm303_vm6, %v971_v32 }
 0x856   :  { %v1047_v34 = vpop.f32.mrb[10].mxu1 }
 0x857   :  { %v3597_v35 = vpop.f32.mrb[11].mxu1  ;;  %3603 = vmatmul.mubr.msk.f32.vlgmr.msra.gmra.mrb[6].mxu1 %vm303_vm6, %v1047_v34 }
 0x92a   :  { %v3604_v37 = vpop.f32.mrb[6].mxu1 }
 0x92b   :  { %v3920_v38 = vadd.f32 %v3604_v37, %v3328_v36  ;;  %v1126_v39 = vpop.f32.mrb[7].mxu1 }
 0x92c   :  { %v3921_v40 = vadd.f32 %v3328_v36, %v1126_v39 }
 0x92d   :  { %v1138_v41 = vadd.f32 %v3920_v38, %v4329_v16 }
 0x92e   :  { %v1137_v42 = vadd.f32 %v3921_v40, %v4327_v15  ;;  %v1184_v15 = vld [vmem:[#allocation5] sm:$0xff] }
 0x92f   :  { %v1144_v43 = vsel %vm217_vm4, %v1138_v41, 0.0  ;;  %v3824_v55 = vpack.c.bf16 %v1185_v54, %v1184_v15 }
 0x930   :  { %1145 = vadd.xlane.f32.xlu0 %v1144_v43  ;;  %v1141_v44 = vsel %vm217_vm4, %v1137_v42, 0.0 }
 0x931   :  { %1142 = vadd.xlane.f32.xlu1 %v1141_v44  ;;  %3825 = vmatprep.subr.bf16.mxu1 %v3824_v55 }
 0x932   :  { %3827 = vmatpush3.bf16.msra.mxu1 %v3824_v55 }
 0x933   :  { %3829 = vmatprep.subr.bf16.mxu1 %v3828_v58 }
 0x936   :  { %3831 = vmatpush3.bf16.msra.mxu1 %v3828_v58  ;;  %v3347_v58 = vld [vmem:[%s4710_s14] ss:$0 sm:$0xff] }
 0x937   :  { %3833 = vmatprep.subr.bf16.mxu1 %v3832_v61 }
 0x9bd   :  { %v1146_v45 = vpop.xlane.xlu0 %1145 }
 0x9be   :  { %v1149_v46 = vmul.f32 0.03125, %v1146_v45  ;;  %v1143_v47 = vpop.xlane.xlu1 %1142 }
 0x9bf   :  { %v1148_v48 = vmul.f32 0.03125, %v1143_v47  ;;  %v3349_v47 = vld [vmem:[%s4700_s4 + $0x20] sm:$0xff] }
 0x9c0   :  { %v1151_v49 = vsub.f32 %v1138_v41, %v1149_v46 }
 0x9c1   :  { %v1150_v50 = vsub.f32 %v1137_v42, %v1148_v48  ;;  %v3350_v48 = vld [vmem:[%s4700_s4 + $0x28] sm:$0xff] }
 0x9c2   :  { %v1153_v51 = vmul.f32 %v1151_v49, %v1151_v49 }
 0x9c3   :  { %v1152_v52 = vmul.f32 %v1150_v50, %v1150_v50 }
 0x9c4   :  { %v1157_v53 = vsel %vm217_vm4, %v1153_v51, 0.0  ;;  %v3352_v51 = vld [vmem:[%s4700_s4 + $0x38] sm:$0xff] }
 0x9c5   :  { %1158 = vadd.xlane.f32.xlu0 %v1157_v53  ;;  %v1154_v16 = vsel %vm217_vm4, %v1152_v52, 0.0 }
 0x9c6   :  { %1155 = vadd.xlane.f32.xlu1 %v1154_v16 }
 0xa52   :  { %v1159_v62 = vpop.xlane.xlu0 %1158 }
 0xa53   :  { %v1161_v63 = vmul.f32 0.03125, %v1159_v62  ;;  %v1156_v0 = vpop.xlane.xlu1 %1155  ;;  %v3348_v62 = vld [vmem:[%s4711_s15] ss:$0 sm:$0xff] }
 0xa54   :  { %v1160_v1 = vmul.f32 0.03125, %v1156_v0 }
 0xa55   :  { %v1163_v2 = vadd.f32 1e-05, %v1161_v63 }
 0xa56   :  { %v1162_v3 = vadd.f32 1e-05, %v1160_v1 }
 0xa57   :  { %3975 = vrsqrt.f32 %v1163_v2 }
 0xa58   :  { %3977 = vrsqrt.f32 %v1162_v3  ;;  %v3354_v3 = vld [vmem:[%s4701_s5 + $0x1] ss:$0 sm:$0xff] }
 0xa61   :  { %v3976_v4 = vpop.eup %3975 }
 0xa62   :  { %v3978_v6 = vpop.eup %3977  ;;  %v1167_v7 = vmul.f32 %v3976_v4, %v1151_v49  ;;  %v3840_v49 = vpack.c.bf16 %v3350_v48, %v3349_v47 }
 0xa63   :  { %v1166_v8 = vmul.f32 %v3978_v6, %v1150_v50  ;;  %v3351_v50 = vld [vmem:[%s4700_s4 + $0x30] sm:$0xff]  ;;  %s4099_s4 = scalar_lea.vmem %s3304_s30, 32 }
 0xa64   :  { %v1175_v10 = vmul.f32 %v3339_v5, %v1167_v7  ;;  %v3844_v52 = vpack.c.bf16 %v3352_v51, %v3351_v50  ;;  %p4100_p4 = scmp.ne.s32.totalorder %s3304_s30, %s4099_s4  ;;  %p4105_p6 = scmp.lt.s32.totalorder %s4099_s4, %s4099_s4 }
 0xa65   :  { %v1174_v11 = vmul.f32 %v3339_v5, %v1166_v8 }
 0xa66   :  { %v1183_v13 = vadd.f32 %v3340_v9, %v1175_v10  ;;  %p4106_p7 = por %p4105_p6, %p4104_p5 }
 0xa67   :  { %v1182_v12 = vadd.f32 %v3340_v9, %v1174_v11 }
 0xa68   :  { %p4107_p8 = pnand %p4106_p7, %p4100_p4 }
 0xa69   :  { %3613 = vmatprep.mubr.msk.f32.mxu1 %vm217_vm4, %v1182_v12 }
 0xa6a   :  { %3614 = vmatmul.mubr.msk.f32.vlgmr.msra.gmra.mrb[12].mxu1 %vm217_vm4, %v1183_v13 }
 0xa6b   :  { %3835 = vmatpush3.bf16.msra.mxu1 %v3832_v61 }
 0xa6c   :  { %3837 = vmatprep.subr.bf16.mxu1 %v3836_v19 }
 0xa6f   :  { %3839 = vmatpush3.bf16.msra.mxu1 %v3836_v19 }
 0xa70   :  { %3841 = vmatprep.subr.bf16.mxu1 %v3840_v49 }
 0xb3d   :  { %v3615_v23 = vpop.f32.mrb[12].mxu1 }
 0xb3e   :  { %v1273_v24 = vadd.f32 %v3615_v23, %v3341_v20  ;;  %v1267_v26 = vpop.f32.mrb[13].mxu1 }
 0xb3f   :  { %v1268_v27 = vadd.f32 %v3341_v20, %v1267_v26 }
 0xb40   :  { %v1277_v28 = vmax.f32 %v1273_v24, 0.0 }
 0xb41   :  { %v1276_v22 = vmax.f32 %v1268_v27, 0.0 }
 0xb43   :  { %3624 = vmatprep.mubr.msk.f32.mxu1 %vm217_vm4, %v1276_v22 }
 0xb44   :  { %3625 = vmatmul.mubr.msk.f32.vlgmr.msra.gmra.mrb[14].mxu1 %vm217_vm4, %v1277_v28 }
 0xb45   :  { %3843 = vmatpush3.bf16.msra.mxu1 %v3840_v49 }
 0xb46   :  { %3845 = vmatprep.subr.bf16.mxu1 %v3844_v52 }
 0xb49   :  { %3847 = vmatpush3.bf16.msra.mxu1 %v3844_v52 }
 0xb4a   :  { %3638 = vmatprep.subr.mxu1 %v4136_v17 }
 0xc17   :  { %v3626_v21 = vpop.f32.mrb[14].mxu1 }
 0xc18   :  { %v1367_v30 = vadd.f32 %v3626_v21, %v3344_v29  ;;  %v1361_v31 = vpop.f32.mrb[15].mxu1 }
 0xc19   :  { %v1362_v32 = vadd.f32 %v3344_v29, %v1361_v31 }
 0xc1a   :  { %v1371_v33 = vadd.f32 %v1367_v30, %v1183_v13 }
 0xc1b   :  { %v1370_v34 = vadd.f32 %v1362_v32, %v1182_v12 }
 0xc1c   :  { %v1377_v35 = vsel %vm217_vm4, %v1371_v33, 0.0 }
 0xc1d   :  { %1378 = vadd.xlane.f32.xlu0 %v1377_v35  ;;  %v1374_v36 = vsel %vm217_vm4, %v1370_v34, 0.0 }
 0xc1e   :  { %1375 = vadd.xlane.f32.xlu1 %v1374_v36 }
 0xcaa   :  { %v1379_v37 = vpop.xlane.xlu0 %1378 }
 0xcab   :  { %v1381_v38 = vmul.f32 0.03125, %v1379_v37  ;;  %v1376_v39 = vpop.xlane.xlu1 %1375 }
 0xcac   :  { %v1380_v40 = vmul.f32 0.03125, %v1376_v39 }
 0xcad   :  { %v1383_v41 = vsub.f32 %v1371_v33, %v1381_v38  ;;  %v3364_v33 = vld [vmem:[%s4702_s6 + $0x20] sm:$0xff] }
 0xcae   :  { %v1382_v42 = vsub.f32 %v1370_v34, %v1380_v40  ;;  %v3365_v34 = vld [vmem:[%s4702_s6 + $0x28] sm:$0xff] }
 0xcaf   :  { %v1385_v43 = vmul.f32 %v1383_v41, %v1383_v41  ;;  %v3848_v36 = vpack.c.bf16 %v3365_v34, %v3364_v33 }
 0xcb0   :  { %v1384_v44 = vmul.f32 %v1382_v42, %v1382_v42 }
 0xcb1   :  { %v1389_v45 = vsel %vm217_vm4, %v1385_v43, 0.0 }
 0xcb2   :  { %1390 = vadd.xlane.f32.xlu0 %v1389_v45  ;;  %v1386_v46 = vsel %vm217_vm4, %v1384_v44, 0.0 }
 0xcb3   :  { %1387 = vadd.xlane.f32.xlu1 %v1386_v46 }
 0xd3f   :  { %v1391_v53 = vpop.xlane.xlu0 %1390 }
 0xd40   :  { %v1393_v16 = vmul.f32 0.03125, %v1391_v53  ;;  %v1388_v15 = vpop.xlane.xlu1 %1387 }
 0xd41   :  { %v1392_v54 = vmul.f32 0.03125, %v1388_v15 }
 0xd42   :  { %v1395_v55 = vadd.f32 1e-05, %v1393_v16 }
 0xd43   :  { %v1394_v56 = vadd.f32 1e-05, %v1392_v54 }
 0xd44   :  { %3979 = vrsqrt.f32 %v1395_v55 }
 0xd45   :  { %3981 = vrsqrt.f32 %v1394_v56 }
 0xd4e   :  { %v3980_v57 = vpop.eup %3979 }
 0xd4f   :  { %v3982_v59 = vpop.eup %3981  ;;  %v1399_v60 = vmul.f32 %v3980_v57, %v1383_v41 }
 0xd50   :  { %v1398_v61 = vmul.f32 %v3982_v59, %v1382_v42 }
 0xd51   :  { %v1407_v63 = vmul.f32 %v3347_v58, %v1399_v60 }
 0xd52   :  { %v1406_v0 = vmul.f32 %v3347_v58, %v1398_v61 }
 0xd53   :  { %v4483_v2 = vadd.f32 %v3348_v62, %v1407_v63 }
 0xd54   :  { %v4481_v1 = vadd.f32 %v3348_v62, %v1406_v0 }
 0xd56   :  { %3635 = vmatprep.mubr.msk.f32.mxu1 %vm217_vm4, %v4481_v1 }
 0xd57   :  { %3636 = vmatmul.mubr.msk.f32.vlgmr.msra.gmra.mrb[16].mxu1 %vm217_vm4, %v4483_v2 }
 0xd58   :  { %3640 = vmatprep.mubr.msk.f32.mxu1 %vm4137_vm5, %v4136_v17 }
 0xe2a   :  { %v3637_v4 = vpop.f32.mrb[16].mxu1 }
 0xe2b   :  { %v4494_v5 = vadd.f32 %v3637_v4, %v3354_v3  ;;  %v1501_v6 = vpop.f32.mrb[17].mxu1 }
 0xe2c   :  { %v4496_v7 = vadd.f32 %v3354_v3, %v1501_v6 }
 0xe2d   :  { %1590 = vrot.lane.b32.xlu0 %v4494_v5, %s4138_s27 }
 0xe2e   :  { %1513 = vrot.lane.b32.xlu1 %v4496_v7, %s4138_s27 }
 0xe9f   :  { %v1591_v8 = vpop.permute.xlu0 %1590 }
 0xea0   :  { %3644 = vmatpush3.xpose.msk.msra.mxu0 %vm303_vm6, %v1591_v8  ;;  %v1514_v9 = vpop.permute.xlu1 %1513 }
 0xea1   :  { %3639 = vmatpush3.xpose.msk.msra.mxu1 %vm303_vm6, %v1514_v9  ;;  %3653 = vmatprep.subr.mxu0 %v4136_v17 }
 0xea2   :  { %3648 = vmatprep.subr.mxu1 %v4136_v17 }
 0xea3   :  { %3646 = vmatmul.mubr.msk.f32.vlgmr.msra.gmra.mrb[10].mxu0 %vm303_vm6, %v4494_v5 }
 0xea4   :  { %3641 = vmatmul.mubr.msk.f32.vlgmr.msra.gmra.mrb[18].mxu1 %vm303_vm6, %v4496_v7  ;;  %3655 = vmatprep.mubr.msk.f32.mxu0 %vm4137_vm5, %v4136_v17 }
 0xea5   :  { %3650 = vmatprep.mubr.msk.f32.mxu1 %vm4137_vm5, %v4136_v17 }
 0xf76   :  { %v1662_v10 = vpop.f32.mrb[10].mxu0 }
 0xf77   :  { %v1663_v11 = vadd.f32 %v1662_v10, %v4364_v25  ;;  %v1585_v12 = vpop.f32.mrb[18].mxu1  ;;  %v3647_v13 = vpop.f32.mrb[11].mxu0  ;;  %v3376_v10 = vld [vmem:[%s4702_s6 + $0x38] sm:$0xff] }
 0xf78   :  { %v1586_v14 = vadd.f32 %v1585_v12, %v4364_v25  ;;  %v3642_v18 = vpop.f32.mrb[19].mxu1 }
 0xf79   :  { %v1669_v19 = vsel %vm455_vm7, %v1663_v11, -inf }
 0xf7a   :  { %1670 = vmax.xlane.f32.xlu0 %v1669_v19  ;;  %v1666_v20 = vsel %vm455_vm7, %v1586_v14, -inf }
 0xf7b   :  { %1667 = vmax.xlane.f32.xlu1 %v1666_v20 }
0x1007   :  { %v1671_v23 = vpop.xlane.xlu0 %1670 }
0x1008   :  { %v1673_v24 = vsub.f32 %v1663_v11, %v1671_v23  ;;  %v1668_v26 = vpop.xlane.xlu1 %1667 }
0x1009   :  { %v1672_v27 = vsub.f32 %v1586_v14, %v1668_v26 }
0x100a   :  { %v1676_v22 = vmul.f32 1.442695, %v1673_v24  ;;  %v3368_v24 = vld [vmem:[%s4703_s7 + $0x1] ss:$0 sm:$0xff] }
0x100b   :  { %v1674_v28 = vmul.f32 1.442695, %v1672_v27 }
0x100c   :  { %3983 = vpow2.f32 %v1676_v22 }
0x100d   :  { %3985 = vpow2.f32 %v1674_v28 }
0x1016   :  { %v3984_v29 = vpop.eup %3983 }
0x1017   :  { %v3986_v21 = vpop.eup %3985  ;;  %v1681_v30 = vsel %vm455_vm7, %v3984_v29, 0.0 }
0x1018   :  { %1682 = vadd.xlane.f32.xlu0 %v1681_v30  ;;  %v1678_v31 = vsel %vm455_vm7, %v3986_v21, 0.0 }
0x1019   :  { %1679 = vadd.xlane.f32.xlu1 %v1678_v31 }
0x102a   :  { %1688 = vrot.lane.b32.xlu1 %v4496_v7, %s4139_s1 }
0x102e   :  { %1764 = vrot.lane.b32.xlu0 %v4494_v5, %s4139_s1  ;;  %1934 = vrot.lane.b32.xlu1 %v4496_v7, %s4141_s16 }
0x1032   :  { %1932 = vrot.lane.b32.xlu0 %v4496_v7, %s4140_s21  ;;  %2012 = vrot.lane.b32.xlu1 %v4494_v5, %s4141_s16 }
0x1036   :  { %2010 = vrot.lane.b32.xlu1 %v4494_v5, %s4140_s21 }
0x10a5   :  { %v1683_v32 = vpop.xlane.xlu0 %1682 }
0x10a6   :  { %3987 = vrcp.f32 %v1683_v32  ;;  %v1680_v35 = vpop.xlane.xlu1 %1679 }
0x10a7   :  { %3989 = vrcp.f32 %v1680_v35 }
0x10a9   :  { %v1765_v37 = vpop.permute.xlu0 %1764 }
0x10aa   :  { %3654 = vmatpush3.msra.mxu0 %v1765_v37  ;;  %v1689_v38 = vpop.permute.xlu1 %1688 }
0x10ab   :  { %3649 = vmatpush3.msra.mxu1 %v1689_v38  ;;  %3665 = vmatprep.subr.mxu0 %v4136_v17 }
0x10ac   :  { %3849 = vmatprep.subr.bf16.mxu1 %v3848_v36 }
0x10ad   :  { %v1933_v44 = vpop.permute.xlu0 %1932 }
0x10ae   :  { %v1935_v43 = vpop.permute.xlu1 %1934 }
0x10b0   :  { %v3988_v39 = vpop.eup %3987 }
0x10b1   :  { %v3990_v40 = vpop.eup %3989  ;;  %v1687_v41 = vmul.f32 %v3988_v39, %v3984_v29 }
0x10b2   :  { %v1686_v42 = vmul.f32 %v3990_v40, %v3986_v21  ;;  %v2013_v45 = vpop.permute.xlu1 %2012 }
0x10b3   :  { %3656 = vmatmul.mubr.msk.f32.vlgmr.msra.gmra.mrb[12].mxu0 %vm455_vm7, %v1687_v41  ;;  %v2398_v41 = vld [vmem:[#allocation5 + $0x28] sm:$0xff] }
0x10b4   :  { %3666 = vmatpush3.xpose.msk.msra.mxu0 %vm303_vm6, %v1935_v43  ;;  %3651 = vmatmul.mubr.msk.f32.vlgmr.msra.gmra.mrb[20].mxu1 %vm455_vm7, %v1686_v42  ;;  %v2399_v43 = vld [vmem:[#allocation5 + $0x30] sm:$0xff] }
0x10b5   :  { %3667 = vmatprep.mubr.msk.f32.mxu0 %vm4137_vm5, %v4136_v17  ;;  %3851 = vmatpush3.bf16.msra.mxu1 %v3848_v36 }
0x10b6   :  { %3670 = vmatprep.subr.mxu1 %v4136_v17  ;;  %3675 = vmatprep.subr.mxu0 %v4136_v17  ;;  %v2011_v53 = vpop.permute.xlu1 %2010 }
0x10b7   :  { %3668 = vmatmul.mubr.msk.f32.vlgmr.msra.gmra.mrb[14].mxu0 %vm303_vm6, %v1933_v44  ;;  %v2400_v44 = vld [vmem:[#allocation5 + $0x38] sm:$0xff] }
0x10b8   :  { %3677 = vmatprep.mubr.msk.f32.mxu0 %vm4137_vm5, %v4136_v17 }
0x1186   :  { %v1836_v46 = vpop.f32.mrb[12].mxu0 }
0x1187   :  { %v1760_v47 = vpop.f32.mrb[20].mxu1  ;;  %v3657_v48 = vpop.f32.mrb[13].mxu0 }
0x1188   :  { %v3652_v49 = vpop.f32.mrb[21].mxu1  ;;  %3662 = vmatprep.mubr.msk.f32.mxu1 %vm303_vm6, %v1760_v47  ;;  %v2494_v47 = vld [vmem:[#allocation7 + $0x28] sm:$0xff] }
0x1189   :  { %3663 = vmatmul.mubr.msk.f32.vlgmr.msra.gmra.mrb[22].mxu1 %vm303_vm6, %v1836_v46  ;;  %v2493_v46 = vld [vmem:[#allocation7 + $0x20] sm:$0xff] }
0x118a   :  { %3671 = vmatpush3.xpose.msk.msra.mxu1 %vm303_vm6, %v2013_v45  ;;  %v2006_v50 = vpop.f32.mrb[14].mxu0  ;;  %3672 = vmatprep.mubr.msk.f32.mxu1 %vm4137_vm5, %v4136_v17  ;;  %v3860_v45 = vpack.c.bf16 %v2400_v44, %v2399_v43  ;;  %v3864_v48 = vpack.c.bf16 %v2494_v47, %v2493_v46 }
0x118b   :  { %v2007_v51 = vadd.f32 %v2006_v50, %v4364_v25  ;;  %v3669_v52 = vpop.f32.mrb[15].mxu0  ;;  %3680 = vmatprep.subr.mxu1 %v4136_v17 }
0x118d   :  { %3673 = vmatmul.mubr.msk.f32.vlgmr.msra.gmra.mrb[24].mxu1 %vm303_vm6, %v2011_v53  ;;  %v2088_v16 = vsel %vm455_vm7, %v2007_v51, -inf }
0x118e   :  { %2089 = vmax.xlane.f32.xlu0 %v2088_v16  ;;  %3682 = vmatprep.mubr.msk.f32.mxu1 %vm4137_vm5, %v4136_v17 }
0x121b   :  { %v2090_v15 = vpop.xlane.xlu0 %2089 }
0x121c   :  { %v2094_v54 = vsub.f32 %v2007_v51, %v2090_v15 }
0x121e   :  { %v2096_v55 = vmul.f32 1.442695, %v2094_v54  ;;  %v3381_v54 = vld [vmem:[%s4708_s12 + $0x1] ss:$0 sm:$0xff] }
0x1220   :  { %3991 = vpow2.f32 %v2096_v55 }
0x122a   :  { %v3992_v56 = vpop.eup %3991 }
0x122b   :  { %v2100_v57 = vsel %vm455_vm7, %v3992_v56, 0.0 }
0x122c   :  { %2101 = vadd.xlane.f32.xlu0 %v2100_v57 }
0x1260   :  { %v2084_v58 = vpop.f32.mrb[24].mxu1 }
0x1261   :  { %v2085_v59 = vadd.f32 %v2084_v58, %v4364_v25  ;;  %v3674_v60 = vpop.f32.mrb[25].mxu1  ;;  %v3382_v58 = vld [vmem:[%s4709_s13 + $0x1] ss:$0 sm:$0xff] }
0x1263   :  { %v2091_v61 = vsel %vm455_vm7, %v2085_v59, -inf }
0x1264   :  { %2092 = vmax.xlane.f32.xlu1 %v2091_v61 }
0x1275   :  { %2110 = vrot.lane.b32.xlu1 %v4496_v7, %s4142_s28  ;;  %v3375_v7 = vld [vmem:[%s4702_s6 + $0x30] sm:$0xff] }
0x1276   :  { %v3852_v12 = vpack.c.bf16 %v3376_v10, %v3375_v7 }
0x12b9   :  { %v2102_v62 = vpop.xlane.xlu0 %2101 }
0x12ba   :  { %3993 = vrcp.f32 %v2102_v62 }
0x12c4   :  { %v3994_v0 = vpop.eup %3993 }
0x12c5   :  { %v2108_v6 = vmul.f32 %v3994_v0, %v3992_v56  ;;  %v2496_v0 = vld [vmem:[#allocation7 + $0x38] sm:$0xff] }
0x12f1   :  { %v2093_v63 = vpop.xlane.xlu1 %2092 }
0x12f2   :  { %v2095_v3 = vsub.f32 %v2085_v59, %v2093_v63  ;;  %v2495_v63 = vld [vmem:[#allocation7 + $0x30] sm:$0xff] }
0x12f4   :  { %v2098_v4 = vmul.f32 1.442695, %v2095_v3  ;;  %v3868_v3 = vpack.c.bf16 %v2496_v0, %v2495_v63  ;;  %v2806_v0 = vld [vmem:[#allocation8 + $0x50] sm:$0xff] }
0x12f5   :  { %v2111_v8 = vpop.permute.xlu1 %2110 }
0x12f6   :  { %3995 = vpow2.f32 %v2098_v4  ;;  %3676 = vmatpush3.msra.mxu0 %v2111_v8  ;;  %v3384_v4 = vld [vmem:[%s4705_s9 + $0x1] ss:$0 sm:$0xff] }
0x12f7   :  { %3678 = vmatmul.mubr.msk.f32.vlgmr.msra.gmra.mrb[16].mxu0 %vm455_vm7, %v2108_v6 }
0x12f8   :  { %3722 = vmatprep.mubr.msk.f32.mxu0 %vm4137_vm5, %v4136_v17 }
0x1300   :  { %v3996_v25 = vpop.eup %3995 }
0x1301   :  { %v2103_v9 = vsel %vm455_vm7, %v3996_v25, 0.0 }
0x1302   :  { %2104 = vadd.xlane.f32.xlu0 %v2103_v9 }
0x1318   :  { %2186 = vrot.lane.b32.xlu0 %v4494_v5, %s4142_s28 }
0x138f   :  { %v2105_v11 = vpop.xlane.xlu0 %2104 }
0x1390   :  { %3997 = vrcp.f32 %v2105_v11  ;;  %v3388_v11 = vld [vmem:[%s4707_s11 + $0x1] ss:$0 sm:$0xff] }
0x1393   :  { %v2187_v13 = vpop.permute.xlu0 %2186 }
0x1394   :  { %3681 = vmatpush3.msra.mxu1 %v2187_v13 }
0x1395   :  { %3853 = vmatprep.subr.bf16.mxu1 %v3852_v12 }
0x139a   :  { %v3998_v14 = vpop.eup %3997 }
0x139b   :  { %v2109_v18 = vmul.f32 %v3998_v14, %v3996_v25 }
0x139d   :  { %3683 = vmatmul.mubr.msk.f32.vlgmr.msra.gmra.mrb[26].mxu1 %vm455_vm7, %v2109_v18 }
0x139e   :  { %3855 = vmatpush3.bf16.msra.mxu1 %v3852_v12 }
0x13ca   :  { %v2182_v5 = vpop.f32.mrb[16].mxu0 }
0x13cb   :  { %v3679_v19 = vpop.f32.mrb[17].mxu0  ;;  %3689 = vmatprep.mubr.msk.f32.mxu1 %vm303_vm6, %v2182_v5 }
0x1470   :  { %v2258_v20 = vpop.f32.mrb[26].mxu1 }
0x1471   :  { %v3684_v23 = vpop.f32.mrb[27].mxu1  ;;  %3690 = vmatmul.mubr.msk.f32.vlgmr.msra.gmra.mrb[22].mxu1 %vm303_vm6, %v2258_v20 }
0x1544   :  { %v3691_v26 = vpop.f32.mrb[22].mxu1 }
0x1545   :  { %v3922_v27 = vadd.f32 %v3691_v26, %v3368_v24  ;;  %v2337_v22 = vpop.f32.mrb[23].mxu1 }
0x1546   :  { %v3923_v28 = vadd.f32 %v3368_v24, %v2337_v22 }
0x1547   :  { %v2349_v29 = vadd.f32 %v3922_v27, %v4483_v2 }
0x1548   :  { %v2348_v21 = vadd.f32 %v3923_v28, %v4481_v1  ;;  %v2397_v1 = vld [vmem:[#allocation5 + $0x20] sm:$0xff] }
0x1549   :  { %v2357_v30 = vsel %vm217_vm4, %v2349_v29, 0.0  ;;  %v3856_v42 = vpack.c.bf16 %v2398_v41, %v2397_v1 }
0x154a   :  { %2358 = vadd.xlane.f32.xlu0 %v2357_v30  ;;  %v2354_v31 = vsel %vm217_vm4, %v2348_v21, 0.0 }
0x154b   :  { %2355 = vadd.xlane.f32.xlu1 %v2354_v31  ;;  %3857 = vmatprep.subr.bf16.mxu1 %v3856_v42 }
0x154c   :  { %3859 = vmatpush3.bf16.msra.mxu1 %v3856_v42 }
0x154d   :  { %3861 = vmatprep.subr.bf16.mxu1 %v3860_v45 }
0x1550   :  { %3863 = vmatpush3.bf16.msra.mxu1 %v3860_v45  ;;  %v3393_v45 = vld [vmem:[%s4710_s14 + $0x1] ss:$0 sm:$0xff] }
0x1551   :  { %3865 = vmatprep.subr.bf16.mxu1 %v3864_v48 }
0x15d7   :  { %v2359_v32 = vpop.xlane.xlu0 %2358 }
0x15d8   :  { %v2361_v33 = vmul.f32 0.03125, %v2359_v32  ;;  %v2356_v34 = vpop.xlane.xlu1 %2355 }
0x15d9   :  { %v2360_v35 = vmul.f32 0.03125, %v2356_v34  ;;  %v2636_v34 = vld [vmem:[#allocation8 + $0x8] sm:$0xff] }
0x15da   :  { %v2363_v36 = vsub.f32 %v2349_v29, %v2361_v33  ;;  %v2635_v33 = vld [vmem:[#allocation8] sm:$0xff] }
0x15db   :  { %v2362_v37 = vsub.f32 %v2348_v21, %v2360_v35  ;;  %v3873_v35 = vpack.c.bf16 %v2636_v34, %v2635_v33  ;;  %v3050_v33 = vld [vmem:[#allocation8 + $0xb8] sm:$0xff] }
0x15dc   :  { %v2365_v38 = vmul.f32 %v2363_v36, %v2363_v36 }
0x15dd   :  { %v2364_v39 = vmul.f32 %v2362_v37, %v2362_v37 }
0x15de   :  { %v2369_v40 = vsel %vm217_vm4, %v2365_v38, 0.0  ;;  %v2638_v38 = vld [vmem:[#allocation8 + $0x18] sm:$0xff] }
0x15df   :  { %2370 = vadd.xlane.f32.xlu0 %v2369_v40  ;;  %v2366_v2 = vsel %vm217_vm4, %v2364_v39, 0.0 }
0x15e0   :  { %2367 = vadd.xlane.f32.xlu1 %v2366_v2 }
0x166c   :  { %v2371_v49 = vpop.xlane.xlu0 %2370 }
0x166d   :  { %v2373_v50 = vmul.f32 0.03125, %v2371_v49  ;;  %v2368_v51 = vpop.xlane.xlu1 %2367 }
0x166e   :  { %v2372_v52 = vmul.f32 0.03125, %v2368_v51 }
0x166f   :  { %v2375_v53 = vadd.f32 1e-05, %v2373_v50 }
0x1670   :  { %v2374_v16 = vadd.f32 1e-05, %v2372_v52  ;;  %v2724_v52 = vld [vmem:[#allocation8 + $0x20] sm:$0xff] }
0x1671   :  { %3999 = vrsqrt.f32 %v2375_v53  ;;  %v2725_v53 = vld [vmem:[#allocation8 + $0x28] sm:$0xff] }
0x1672   :  { %4001 = vrsqrt.f32 %v2374_v16 }
0x167b   :  { %v4000_v15 = vpop.eup %3999 }
0x167c   :  { %v4002_v55 = vpop.eup %4001  ;;  %v2379_v56 = vmul.f32 %v4000_v15, %v2363_v36  ;;  %v4143_v36 = vmov 0.0|0.0  }
0x167d   :  { %v2378_v57 = vmul.f32 %v4002_v55, %v2362_v37  ;;  %3872 = vmatprep.subr.bf16.mxu0 %v4143_v36  ;;  %v2637_v37 = vld [vmem:[#allocation8 + $0x10] sm:$0xff]  ;;  %v3879_v55 = vpack.c.bf16 %v2725_v53, %v2724_v52 }
0x167e   :  { %v2387_v59 = vmul.f32 %v3381_v54, %v2379_v56  ;;  %3874 = vmatpush3.bf16.msra.mxu0 %v3873_v35  ;;  %v3876_v39 = vpack.c.bf16 %v2638_v38, %v2637_v37  ;;  %v2726_v56 = vld [vmem:[#allocation8 + $0x30] sm:$0xff]  ;;  %v3128_v37 = vld [vmem:[#allocation8 + $0xc0] sm:$0xff]  ;;  %v3129_v38 = vld [vmem:[#allocation8 + $0xc8] sm:$0xff] }
0x167f   :  { %v2386_v60 = vmul.f32 %v3381_v54, %v2378_v57  ;;  %3875 = vmatprep.subr.bf16.mxu0 %v4143_v36  ;;  %v2727_v57 = vld [vmem:[#allocation8 + $0x38] sm:$0xff] }
0x1680   :  { %v2395_v62 = vadd.f32 %v3382_v58, %v2387_v59  ;;  %v3882_v59 = vpack.c.bf16 %v2727_v57, %v2726_v56  ;;  %v3396_v56 = vld [vmem:[%s4727_s18] ss:$0 sm:$0xff] }
0x1681   :  { %v2394_v61 = vadd.f32 %v3382_v58, %v2386_v60  ;;  %v2804_v60 = vld [vmem:[#allocation8 + $0x40] sm:$0xff] }
0x1682   :  { %3877 = vmatpush3.bf16.msra.mxu0 %v3876_v39 }
0x1683   :  { %3700 = vmatprep.mubr.msk.f32.mxu1 %vm217_vm4, %v2394_v61  ;;  %3878 = vmatprep.subr.bf16.mxu0 %v4143_v36 }
0x1684   :  { %3701 = vmatmul.mubr.msk.f32.vlgmr.msra.gmra.mrb[28].mxu1 %vm217_vm4, %v2395_v62 }
0x1685   :  { %3867 = vmatpush3.bf16.msra.mxu1 %v3864_v48  ;;  %v3394_v48 = vld [vmem:[%s4711_s15 + $0x1] ss:$0 sm:$0xff] }
0x1686   :  { %3869 = vmatprep.subr.bf16.mxu1 %v3868_v3 }
0x1689   :  { %3871 = vmatpush3.bf16.msra.mxu1 %v3868_v3  ;;  %v2807_v3 = vld [vmem:[#allocation8 + $0x58] sm:$0xff] }
0x1757   :  { %v3702_v6 = vpop.f32.mrb[28].mxu1 }
0x1758   :  { %v2487_v8 = vadd.f32 %v3702_v6, %v3384_v4  ;;  %v2481_v25 = vpop.f32.mrb[29].mxu1  ;;  %v3888_v6 = vpack.c.bf16 %v2807_v3, %v2806_v0 }
0x1759   :  { %v2482_v9 = vadd.f32 %v3384_v4, %v2481_v25  ;;  %v2886_v25 = vld [vmem:[#allocation8 + $0x68] sm:$0xff] }
0x175a   :  { %v2491_v10 = vmax.f32 %v2487_v8, 0.0  ;;  %v2885_v8 = vld [vmem:[#allocation8 + $0x60] sm:$0xff] }
0x175b   :  { %v2490_v7 = vmax.f32 %v2482_v9, 0.0 }
0x175d   :  { %3711 = vmatprep.mubr.msk.f32.mxu1 %vm217_vm4, %v2490_v7 }
0x175e   :  { %3712 = vmatmul.mubr.msk.f32.vlgmr.msra.gmra.mrb[30].mxu1 %vm217_vm4, %v2491_v10  ;;  %v3891_v10 = vpack.c.bf16 %v2886_v25, %v2885_v8 }
0x1831   :  { %v3713_v12 = vpop.f32.mrb[30].mxu1 }
0x1832   :  { %v2583_v13 = vadd.f32 %v3713_v12, %v3388_v11  ;;  %v2577_v14 = vpop.f32.mrb[31].mxu1  ;;  %v2888_v12 = vld [vmem:[#allocation8 + $0x78] sm:$0xff] }
0x1833   :  { %v2578_v18 = vadd.f32 %v3388_v11, %v2577_v14  ;;  %v2887_v11 = vld [vmem:[#allocation8 + $0x70] sm:$0xff] }
0x1834   :  { %v2587_v5 = vadd.f32 %v2583_v13, %v2395_v62  ;;  %v3894_v14 = vpack.c.bf16 %v2888_v12, %v2887_v11 }
0x1835   :  { %v2586_v19 = vadd.f32 %v2578_v18, %v2394_v61  ;;  %v2805_v61 = vld [vmem:[#allocation8 + $0x48] sm:$0xff]  ;;  %v2966_v18 = vld [vmem:[#allocation8 + $0x80] sm:$0xff] }
0x1836   :  { %v2595_v20 = vsel %vm217_vm4, %v2587_v5, 0.0  ;;  %v3885_v63 = vpack.c.bf16 %v2805_v61, %v2804_v60 }
0x1837   :  { %2596 = vadd.xlane.f32.xlu1 %v2595_v20  ;;  %v2592_v23 = vsel %vm217_vm4, %v2586_v19, 0.0 }
0x1838   :  { %2593 = vadd.xlane.f32.xlu0 %v2592_v23 }
0x18c4   :  { %v2597_v24 = vpop.xlane.xlu1 %2596 }
0x18c5   :  { %v2599_v26 = vmul.f32 0.03125, %v2597_v24  ;;  %v2594_v27 = vpop.xlane.xlu0 %2593  ;;  %v2968_v24 = vld [vmem:[#allocation8 + $0x90] sm:$0xff] }
0x18c6   :  { %v2598_v22 = vmul.f32 0.03125, %v2594_v27 }
0x18c7   :  { %v2601_v28 = vsub.f32 %v2587_v5, %v2599_v26  ;;  %v2967_v5 = vld [vmem:[#allocation8 + $0x88] sm:$0xff]  ;;  %v2969_v26 = vld [vmem:[#allocation8 + $0x98] sm:$0xff] }
0x18c8   :  { %v2600_v29 = vsub.f32 %v2586_v19, %v2598_v22  ;;  %v3897_v23 = vpack.c.bf16 %v2967_v5, %v2966_v18  ;;  %v3900_v22 = vpack.c.bf16 %v2969_v26, %v2968_v24 }
0x18c9   :  { %v2603_v21 = vmul.f32 %v2601_v28, %v2601_v28 }
0x18ca   :  { %v2602_v30 = vmul.f32 %v2600_v29, %v2600_v29 }
0x18cb   :  { %v2607_v31 = vsel %vm217_vm4, %v2603_v21, 0.0 }
0x18cc   :  { %2608 = vadd.xlane.f32.xlu1 %v2607_v31  ;;  %v2604_v32 = vsel %vm217_vm4, %v2602_v30, 0.0 }
0x18cd   :  { %2605 = vadd.xlane.f32.xlu0 %v2604_v32  ;;  %v3049_v32 = vld [vmem:[#allocation8 + $0xb0] sm:$0xff] }
0x18ce   :  { %v3906_v35 = vpack.c.bf16 %v3050_v33, %v3049_v32 }
0x1959   :  { %v2609_v40 = vpop.xlane.xlu1 %2608 }
0x195a   :  { %v2611_v2 = vmul.f32 0.03125, %v2609_v40  ;;  %v2606_v1 = vpop.xlane.xlu0 %2605 }
0x195b   :  { %v2610_v41 = vmul.f32 0.03125, %v2606_v1  ;;  %v3130_v1 = vld [vmem:[#allocation8 + $0xd0] sm:$0xff] }
0x195c   :  { %v2613_v42 = vadd.f32 1e-05, %v2611_v2  ;;  %v3909_v2 = vpack.c.bf16 %v3129_v38, %v3128_v37 }
0x195d   :  { %v2612_v43 = vadd.f32 1e-05, %v2610_v41  ;;  %v3131_v41 = vld [vmem:[#allocation8 + $0xd8] sm:$0xff] }
0x195e   :  { %4003 = vrsqrt.f32 %v2613_v42 }
0x195f   :  { %4005 = vrsqrt.f32 %v2612_v43  ;;  %v3912_v43 = vpack.c.bf16 %v3131_v41, %v3130_v1 }
0x1968   :  { %v4004_v44 = vpop.eup %4003 }
0x1969   :  { %v4006_v46 = vpop.eup %4005  ;;  %v2617_v47 = vmul.f32 %v4004_v44, %v2601_v28  ;;  %v3047_v28 = vld [vmem:[#allocation8 + $0xa0] sm:$0xff] }
0x196a   :  { %v2616_v49 = vmul.f32 %v4006_v46, %v2600_v29  ;;  %v3048_v29 = vld [vmem:[#allocation8 + $0xa8] sm:$0xff]  ;;  %v3209_v44 = vld [vmem:[#allocation8 + $0xe0] sm:$0xff] }
0x196b   :  { %v2625_v50 = vmul.f32 %v3393_v45, %v2617_v47  ;;  %v3903_v31 = vpack.c.bf16 %v3048_v29, %v3047_v28 }
0x196c   :  { %v2624_v51 = vmul.f32 %v3393_v45, %v2616_v49  ;;  %v3210_v45 = vld [vmem:[#allocation8 + $0xe8] sm:$0xff]  ;;  %v3211_v49 = vld [vmem:[#allocation8 + $0xf0] sm:$0xff] }
0x196d   :  { %v4618_v16 = vadd.f32 %v3394_v48, %v2625_v50  ;;  %v3212_v50 = vld [vmem:[#allocation8 + $0xf8] sm:$0xff] }
0x196e   :  { %v4620_v15 = vadd.f32 %v3394_v48, %v2624_v51  ;;  %v3915_v48 = vpack.c.bf16 %v3210_v45, %v3209_v44  ;;  %v3918_v52 = vpack.c.bf16 %v3212_v50, %v3211_v49 }
0x196f   :  { %v2641_v54 = vrot.slane %v4618_v16, 7  ;;  %v2809_v7 = vrot.slane %v4618_v16, 1  ;;  %v2890_v20 = vrot.slane %v4618_v16, 2  ;;  %v2971_v30 = vrot.slane %v4618_v16, 3 }
0x1970   :  { %v2728_v62 = vrot.slane %v4620_v15, 1  ;;  %v2808_v9 = vrot.slane %v4620_v15, 2  ;;  %v2889_v19 = vrot.slane %v4620_v15, 3  ;;  %v2970_v21 = vrot.slane %v4620_v15, 4 }
0x1971   :  { %v2643_v58 = vsel %vm2642_vm8, %v2641_v54, %v4620_v15  ;;  %v3051_v39 = vrot.slane %v4620_v15, 5  ;;  %v3052_v40 = vrot.slane %v4618_v16, 4  ;;  %v3132_v46 = vrot.slane %v4620_v15, 6 }
0x1972   :  { %3723 = vmatmul.mubr.msk.f32.vlgmr.msra.gmra.mrb[18].mxu0 %vm217_vm4, %v2643_v58  ;;  %v2729_v4 = vsel %vm2642_vm8, %v4618_v16, %v2728_v62  ;;  %v2810_v13 = vsel %vm2642_vm8, %v2809_v7, %v2808_v9  ;;  %v2891_v27 = vsel %vm2642_vm8, %v2890_v20, %v2889_v19  ;;  %v2972_v34 = vsel %vm2642_vm8, %v2971_v30, %v2970_v21 }
0x1973   :  { %3880 = vmatpush3.bf16.msra.mxu0 %v3879_v55  ;;  %3733 = vmatprep.mubr.msk.f32.mxu0 %vm4137_vm5, %v4136_v17  ;;  %v3053_v42 = vsel %vm2642_vm8, %v3052_v40, %v3051_v39  ;;  %v3133_v47 = vrot.slane %v4618_v16, 5  ;;  %v3213_v53 = vrot.slane %v4620_v15, 7  ;;  %v3214_v54 = vrot.slane %v4618_v16, 6 }
0x1974   :  { %3881 = vmatprep.subr.bf16.mxu0 %v4143_v36 }
0x1975   :  { %v3134_v51 = vsel %vm2642_vm8, %v3133_v47, %v3132_v46  ;;  %v3215_v55 = vsel %vm2642_vm8, %v3214_v54, %v3213_v53 }
0x1977   :  { %3883 = vmatpush3.bf16.msra.mxu0 %v3882_v59 }
0x1978   :  { %3884 = vmatprep.subr.bf16.mxu0 %v4143_v36 }
0x197a   :  { %3734 = vmatmul.mubr.msk.f32.vlgmr.msra.gmra.mrb[18].mxu0 %vm217_vm4, %v2729_v4 }
0x197b   :  { %3886 = vmatpush3.bf16.msra.mxu0 %v3885_v63  ;;  %3744 = vmatprep.mubr.msk.f32.mxu0 %vm4137_vm5, %v4136_v17 }
0x197c   :  { %3887 = vmatprep.subr.bf16.mxu0 %v4143_v36 }
0x197f   :  { %3889 = vmatpush3.bf16.msra.mxu0 %v3888_v6 }
0x1980   :  { %3890 = vmatprep.subr.bf16.mxu0 %v4143_v36 }
0x1982   :  { %3745 = vmatmul.mubr.msk.f32.vlgmr.msra.gmra.mrb[18].mxu0 %vm217_vm4, %v2810_v13 }
0x1983   :  { %3892 = vmatpush3.bf16.msra.mxu0 %v3891_v10  ;;  %3755 = vmatprep.mubr.msk.f32.mxu0 %vm4137_vm5, %v4136_v17 }
0x1984   :  { %3893 = vmatprep.subr.bf16.mxu0 %v4143_v36 }
0x1987   :  { %3895 = vmatpush3.bf16.msra.mxu0 %v3894_v14 }
0x1988   :  { %3896 = vmatprep.subr.bf16.mxu0 %v4143_v36 }
0x198a   :  { %3756 = vmatmul.mubr.msk.f32.vlgmr.msra.gmra.mrb[18].mxu0 %vm217_vm4, %v2891_v27 }
0x198b   :  { %3898 = vmatpush3.bf16.msra.mxu0 %v3897_v23  ;;  %3766 = vmatprep.mubr.msk.f32.mxu0 %vm4137_vm5, %v4136_v17 }
0x198c   :  { %3899 = vmatprep.subr.bf16.mxu0 %v4143_v36 }
0x198f   :  { %3901 = vmatpush3.bf16.msra.mxu0 %v3900_v22 }
0x1990   :  { %3902 = vmatprep.subr.bf16.mxu0 %v4143_v36 }
0x1992   :  { %3767 = vmatmul.mubr.msk.f32.vlgmr.msra.gmra.mrb[18].mxu0 %vm217_vm4, %v2972_v34 }
0x1993   :  { %3904 = vmatpush3.bf16.msra.mxu0 %v3903_v31  ;;  %3777 = vmatprep.mubr.msk.f32.mxu0 %vm4137_vm5, %v4136_v17 }
0x1994   :  { %3905 = vmatprep.subr.bf16.mxu0 %v4143_v36 }
0x1997   :  { %3907 = vmatpush3.bf16.msra.mxu0 %v3906_v35 }
0x1998   :  { %3908 = vmatprep.subr.bf16.mxu0 %v4143_v36 }
0x199a   :  { %3778 = vmatmul.mubr.msk.f32.vlgmr.msra.gmra.mrb[18].mxu0 %vm217_vm4, %v3053_v42 }
0x199b   :  { %3910 = vmatpush3.bf16.msra.mxu0 %v3909_v2  ;;  %3788 = vmatprep.mubr.msk.f32.mxu0 %vm4137_vm5, %v4136_v17 }
0x199c   :  { %3911 = vmatprep.subr.bf16.mxu0 %v4143_v36 }
0x199f   :  { %3913 = vmatpush3.bf16.msra.mxu0 %v3912_v43 }
0x19a0   :  { %3914 = vmatprep.subr.bf16.mxu0 %v4143_v36 }
0x19a2   :  { %3789 = vmatmul.mubr.msk.f32.vlgmr.msra.gmra.mrb[18].mxu0 %vm217_vm4, %v3134_v51 }
0x19a3   :  { %3916 = vmatpush3.bf16.msra.mxu0 %v3915_v48  ;;  %3799 = vmatprep.mubr.msk.f32.mxu0 %vm4137_vm5, %v4136_v17 }
0x19a4   :  { %3917 = vmatprep.subr.bf16.mxu0 %v4143_v36 }
0x19a7   :  { %3919 = vmatpush3.bf16.msra.mxu0 %v3918_v52 }
0x19aa   :  { %3800 = vmatmul.mubr.msk.f32.vlgmr.msra.gmra.mrb[18].mxu0 %vm217_vm4, %v3215_v55 }
0x1a7d   :  { %v3284_v57 = vpop.f32.mrb[18].mxu0 }
0x1a7e   :  { %v3924_v58 = vadd.f32 %v3396_v56, %v3284_v57  ;;  %v3801_v59 = vpop.f32.mrb[19].mxu0 }
0x1a80   :  { %v3404_v60 = vmul.f32 -1.442695, %v3924_v58 }
0x1a82   :  { %4007 = vpow2.f32 %v3404_v60 }
0x1a8c   :  { %v4008_v17 = vpop.eup %4007 }
0x1a8d   :  { %v3292_v36 = vadd.f32 1.0, %v4008_v17 }
0x1a8f   :  { %4009 = vrcp.f32 %v3292_v36 }
0x1a99   :  { %v4010_v16 = vpop.eup %4009 }
0x1a9a   :  { %3296 = vst.msk [vmem:[#allocation10] sm:$0x3] %vm3295_vm9, %v4010_v16 }
0x1a9b   :  { %4110 = shalt.err (!%p4107_p8)
}
0x1a9c   :  { %s4728_s3 = sld [smem:[#allocation19_spill]] }
0x1aa2   :  { %s4111_s5 = scalar_lea.hbm %s4728_s3, 32 }
0x1aa3   :  { %p4112_p9 = scmp.ne.s32.totalorder %s4728_s3, %s4111_s5  ;;  %p4115_p10 = scmp.lt.u32.totalorder %s4111_s5, %s4728_s3 }
0x1aa5   :  { %p4117_p11 = pnand %p4115_p10, %p4112_p9 }
0x1aa7   :  { %4120 = shalt.err (!%p4117_p11)
}
0x1aa8   :  { %3306 = dma.vmem_to_hbm [thread:$0]  %s3304_s30, 32, %s4728_s3, [#allocation4]  }
0x1aa9   :  { %4127 = dma.done.wait [#allocation4], 32  }
0x1aaa   :  { %4128 = vsyncadd [#allocation4], 4294967264 }
0x1aab   :  { %3310 = vsyncpa [#allocation3], 1 }
0x1aac   :  { %3311 = vsyncpa [#allocation6], 1 }
0x1aad   :  { %3312 = vsyncpa [#allocation9], 1 }
0x1aae   :  { %3313 = vsyncpa [#allocation4], 1 }

</bundles_post_ra>
